<compile_context>
chip_gen: v5e
topology: v5e:2x2
jax: 0.10.0
libtpu: 0.0.40
codegen_flags: <defaults>
</compile_context>

<pallas_src>
import jax
import jax.numpy as jnp
from jax.experimental import pallas as pl
from jax.experimental.pallas import tpu as pltpu

CIN, COUT, K = 3, 3, 3  # fixed by the PyTorch module


def _convt_relu_mean_sigmoid_kernel(x_ref, w_ref, b_ref, out_ref, xp_ref):
    # x_ref : (CIN, H, W)        VMEM f32 -- raw input image (batch squeezed)
    # w_ref : (COUT*CIN*K*K,)    SMEM f32 -- flipped/transposed conv_t weight, flat
    # b_ref : (COUT,)            SMEM f32
    # out_ref:(1, 1)             SMEM f32 -- scalar result
    # xp_ref: (CIN, SP, LP)      VMEM f32 scratch -- zero-padded working image
    H, W = x_ref.shape[1], x_ref.shape[2]
    SP, LP = xp_ref.shape[1], xp_ref.shape[2]
    Ho, Wo = H + K - 1, W + K - 1          # "full" conv_transpose output size
    R = ((Ho + 7) // 8) * 8                # accumulator rows (sublane-native, >= Ho)

    # ---- In-kernel zero padding (replaces the external jnp.pad dispatch). ----
    # Layout: x at rows [K-1, K-1+H), cols [0, W); everything else zero.
    # kh taps come from the row window of the load; kw taps from lane rolls
    # (wrapped-in lanes are zero because LP >= W + K - 1 and cols >= W are zero).
    xp_ref[...] = jnp.zeros(xp_ref.shape, jnp.float32)
    for ci in range(CIN):
        xp_ref[ci, K - 1:K - 1 + H, :W] = x_ref[ci]

    # Per-output-channel accumulators (native-shaped planes), init with bias.
    accs = [jnp.zeros((R, LP), jnp.float32) + b_ref[co] for co in range(COUT)]

    # Fused im2col + conv: 9 full-lane-width row-window loads, lane rolls for kw
    # (XLU slot), 81 scalar*plane FMAs (VPU).
    for ci in range(CIN):
        for kh in range(K):
            rows = xp_ref[ci, kh:kh + R, :]                    # (R, LP)
            for kw in range(K):
                sw = (K - 1) - kw
                plane = rows if sw == 0 else pltpu.roll(rows, shift=sw, axis=1)
                for co in range(COUT):
                    w = w_ref[((co * CIN + ci) * K + kh) * K + kw]
                    accs[co] = accs[co] + w * plane

    # ---- Fused epilogue: one element-wise relu-sum, one masked reduction. ----
    relu_sum = (jnp.maximum(accs[0], 0.0) + jnp.maximum(accs[1], 0.0)
                + jnp.maximum(accs[2], 0.0))
    row_ids = jax.lax.broadcasted_iota(jnp.int32, (R, LP), 0)
    col_ids = jax.lax.broadcasted_iota(jnp.int32, (R, LP), 1)
    valid = (row_ids < Ho) & (col_ids < Wo)
    total = jnp.sum(jnp.where(valid, relu_sum, 0.0))
    mean = total / jnp.float32(COUT * Ho * Wo)
    out_ref[0, 0] = 1.0 / (1.0 + jnp.exp(-mean))


def prepare_weight(w_t):
    """One-time weight prep (hoisted out of the per-call path).

    PyTorch ConvTranspose2d weight (CIN, COUT, K, K) -> spatially flipped,
    channel-transposed direct-conv equivalent (COUT, CIN, K, K), flattened
    for SMEM scalar reads."""
    w_eq = jnp.transpose(jnp.flip(w_t, axis=(2, 3)), (1, 0, 2, 3))
    return w_eq.reshape(COUT * CIN * K * K)


@jax.jit
def model_forward(x, w_flat, b):
    """x: (1, CIN, H, W) f32 NCHW; w_flat: (COUT*CIN*K*K,) from prepare_weight;
    b: (COUT,).  Returns scalar f32 = sigmoid(mean(relu(conv_transpose(x))))."""
    N, C, H, W = x.shape
    # Batch is fixed at 1 (mean over all elements == mean over (COUT,Ho,Wo) only then).
    assert N == 1 and C == CIN
    Ho, Wo = H + K - 1, W + K - 1
    R = -(-Ho // 8) * 8           # accumulator rows (same formula as in-kernel)
    SP = R + 8                    # head-room for the kh row-window offsets
    LP = -(-Wo // 128) * 128      # lane-native width; >= W + K - 1 by construction
    x3 = x.reshape(CIN, H, W)     # free layout change (N == 1)

    out = pl.pallas_call(
        _convt_relu_mean_sigmoid_kernel,
        out_shape=jax.ShapeDtypeStruct((1, 1), jnp.float32),
        in_specs=[
            pl.BlockSpec(memory_space=pltpu.MemorySpace.VMEM),   # raw image
            pl.BlockSpec(memory_space=pltpu.MemorySpace.SMEM),   # weight scalars
            pl.BlockSpec(memory_space=pltpu.MemorySpace.SMEM),   # bias scalars
        ],
        out_specs=pl.BlockSpec(memory_space=pltpu.MemorySpace.SMEM),
        scratch_shapes=[pltpu.VMEM((CIN, SP, LP), jnp.float32)],
    )(x3, w_flat, b)
    return out[0, 0]


if __name__ == "__main__":
    key = jax.random.PRNGKey(0)
    kx, kw, kb = jax.random.split(key, 3)

    # Small shapes consistent with the module (channels fixed at 3, kernel 3, batch 1).
    H = W = 16
    x = jax.random.normal(kx, (1, CIN, H, W), dtype=jnp.float32)

    # Deterministic parameter init (PyTorch-style uniform bound).
    fan_in = CIN * K * K
    bound = 1.0 / float(fan_in) ** 0.5
    w_t = jax.random.uniform(kw, (CIN, COUT, K, K), jnp.float32, -bound, bound)
    b = jax.random.uniform(kb, (COUT,), jnp.float32, -bound, bound)

    # Weight prep done once, outside the jitted per-call path.
    w_flat = jax.block_until_ready(prepare_weight(w_t))

    y = jax.block_until_ready(model_forward(x, w_flat, b))

    # Pure-JAX reference (independent XLA conv path) for a sanity check.
    w_eq = jnp.transpose(jnp.flip(w_t, axis=(2, 3)), (1, 0, 2, 3))
    conv_ref = jax.lax.conv_general_dilated(
        x, w_eq, window_strides=(1, 1),
        padding=[(K - 1, K - 1), (K - 1, K - 1)],
        dimension_numbers=("NCHW", "OIHW", "NCHW"))
    conv_ref = conv_ref + b.reshape(1, COUT, 1, 1)
    ref = jax.nn.sigmoid(jnp.mean(jax.nn.relu(conv_ref)))
    assert jnp.allclose(y, ref, atol=1e-5, rtol=1e-5), (y, ref)

    print("KERNEL_OK")
</pallas_src>

<mosaic_0001>
module attributes {stable_mosaic.version = 11 : i64} {
  func.func @_convt_relu_mean_sigmoid_kernel(%arg0: memref<3x16x16xf32, #tpu.memory_space<vmem>>, %arg1: memref<81xf32, #tpu.memory_space<smem>>, %arg2: memref<3xf32, #tpu.memory_space<smem>>, %arg3: memref<1x1xf32, #tpu.memory_space<smem>>, %arg4: memref<3x32x128xf32, #tpu.memory_space<vmem>>) attributes {dimension_semantics = [], scalar_prefetch = 0 : i64, scratch_operands = 1 : i64, tpu.core_type = #tpu.core_type<tc>} {
    %cst = arith.constant 0.000000e+00 : f32
    %0 = vector.broadcast %cst : f32 to vector<3x32x128xf32>
    %c0 = arith.constant 0 : index
    %c0_0 = arith.constant 0 : index
    %c0_1 = arith.constant 0 : index
    %1 = vector.load %arg4[%c0, %c0_0, %c0_1] : memref<3x32x128xf32, #tpu.memory_space<vmem>>, vector<3x32x128xf32>
    tpu.vector_store %arg4[%c0, %c0_0, %c0_1], %0 {strides = array<i32>} : memref<3x32x128xf32, #tpu.memory_space<vmem>>, vector<3x32x128xf32>,
    %c0_2 = arith.constant 0 : index
    %c0_3 = arith.constant 0 : index
    %c0_4 = arith.constant 0 : index
    %2 = vector.load %arg0[%c0_2, %c0_3, %c0_4] : memref<3x16x16xf32, #tpu.memory_space<vmem>>, vector<1x16x16xf32>
    %3 = vector.shape_cast %2 : vector<1x16x16xf32> to vector<16x16xf32>
    %c0_5 = arith.constant 0 : index
    %c2 = arith.constant 2 : index
    %c0_6 = arith.constant 0 : index
    %4 = vector.load %arg4[%c0_5, %c2, %c0_6] : memref<3x32x128xf32, #tpu.memory_space<vmem>>, vector<1x16x16xf32>
    %5 = vector.shape_cast %4 : vector<1x16x16xf32> to vector<16x16xf32>
    %6 = vector.shape_cast %3 : vector<16x16xf32> to vector<1x16x16xf32>
    tpu.vector_store %arg4[%c0_5, %c2, %c0_6], %6 {strides = array<i32>} : memref<3x32x128xf32, #tpu.memory_space<vmem>>, vector<1x16x16xf32>,
    %c1 = arith.constant 1 : index
    %c0_7 = arith.constant 0 : index
    %c0_8 = arith.constant 0 : index
    %7 = vector.load %arg0[%c1, %c0_7, %c0_8] : memref<3x16x16xf32, #tpu.memory_space<vmem>>, vector<1x16x16xf32>
    %8 = vector.shape_cast %7 : vector<1x16x16xf32> to vector<16x16xf32>
    %c1_9 = arith.constant 1 : index
    %c2_10 = arith.constant 2 : index
    %c0_11 = arith.constant 0 : index
    %9 = vector.load %arg4[%c1_9, %c2_10, %c0_11] : memref<3x32x128xf32, #tpu.memory_space<vmem>>, vector<1x16x16xf32>
    %10 = vector.shape_cast %9 : vector<1x16x16xf32> to vector<16x16xf32>
    %11 = vector.shape_cast %8 : vector<16x16xf32> to vector<1x16x16xf32>
    tpu.vector_store %arg4[%c1_9, %c2_10, %c0_11], %11 {strides = array<i32>} : memref<3x32x128xf32, #tpu.memory_space<vmem>>, vector<1x16x16xf32>,
    %c2_12 = arith.constant 2 : index
    %c0_13 = arith.constant 0 : index
    %c0_14 = arith.constant 0 : index
    %12 = vector.load %arg0[%c2_12, %c0_13, %c0_14] : memref<3x16x16xf32, #tpu.memory_space<vmem>>, vector<1x16x16xf32>
    %13 = vector.shape_cast %12 : vector<1x16x16xf32> to vector<16x16xf32>
    %c2_15 = arith.constant 2 : index
    %c2_16 = arith.constant 2 : index
    %c0_17 = arith.constant 0 : index
    %14 = vector.load %arg4[%c2_15, %c2_16, %c0_17] : memref<3x32x128xf32, #tpu.memory_space<vmem>>, vector<1x16x16xf32>
    %15 = vector.shape_cast %14 : vector<1x16x16xf32> to vector<16x16xf32>
    %16 = vector.shape_cast %13 : vector<16x16xf32> to vector<1x16x16xf32>
    tpu.vector_store %arg4[%c2_15, %c2_16, %c0_17], %16 {strides = array<i32>} : memref<3x32x128xf32, #tpu.memory_space<vmem>>, vector<1x16x16xf32>,
    %cst_18 = arith.constant 0.000000e+00 : f32
    %17 = vector.broadcast %cst_18 : f32 to vector<24x128xf32>
    %c0_19 = arith.constant 0 : index
    %18 = memref.load %arg2[%c0_19] : memref<3xf32, #tpu.memory_space<smem>>
    %19 = vector.broadcast %18 : f32 to vector<24x128xf32>
    %20 = arith.addf %17, %19 : vector<24x128xf32>
    %cst_20 = arith.constant 0.000000e+00 : f32
    %21 = vector.broadcast %cst_20 : f32 to vector<24x128xf32>
    %c1_21 = arith.constant 1 : index
    %22 = memref.load %arg2[%c1_21] : memref<3xf32, #tpu.memory_space<smem>>
    %23 = vector.broadcast %22 : f32 to vector<24x128xf32>
    %24 = arith.addf %21, %23 : vector<24x128xf32>
    %cst_22 = arith.constant 0.000000e+00 : f32
    %25 = vector.broadcast %cst_22 : f32 to vector<24x128xf32>
    %c2_23 = arith.constant 2 : index
    %26 = memref.load %arg2[%c2_23] : memref<3xf32, #tpu.memory_space<smem>>
    %27 = vector.broadcast %26 : f32 to vector<24x128xf32>
    %28 = arith.addf %25, %27 : vector<24x128xf32>
    %c0_24 = arith.constant 0 : index
    %c0_25 = arith.constant 0 : index
    %c0_26 = arith.constant 0 : index
    %29 = vector.load %arg4[%c0_24, %c0_25, %c0_26] : memref<3x32x128xf32, #tpu.memory_space<vmem>>, vector<1x24x128xf32>
    %30 = vector.shape_cast %29 : vector<1x24x128xf32> to vector<24x128xf32>
    %c2_i32 = arith.constant 2 : i32
    %31 = tpu.dynamic_rotate %30 by %c2_i32 dim 1 : vector<24x128xf32>, i32 -> vector<24x128xf32>
    %c0_27 = arith.constant 0 : index
    %32 = memref.load %arg1[%c0_27] : memref<81xf32, #tpu.memory_space<smem>>
    %33 = vector.broadcast %32 : f32 to vector<24x128xf32>
    %34 = arith.mulf %33, %31 : vector<24x128xf32>
    %35 = arith.addf %20, %34 : vector<24x128xf32>
    %c27 = arith.constant 27 : index
    %36 = memref.load %arg1[%c27] : memref<81xf32, #tpu.memory_space<smem>>
    %37 = vector.broadcast %36 : f32 to vector<24x128xf32>
    %38 = arith.mulf %37, %31 : vector<24x128xf32>
    %39 = arith.addf %24, %38 : vector<24x128xf32>
    %c54 = arith.constant 54 : index
    %40 = memref.load %arg1[%c54] : memref<81xf32, #tpu.memory_space<smem>>
    %41 = vector.broadcast %40 : f32 to vector<24x128xf32>
    %42 = arith.mulf %41, %31 : vector<24x128xf32>
    %43 = arith.addf %28, %42 : vector<24x128xf32>
    %c1_i32 = arith.constant 1 : i32
    %44 = tpu.dynamic_rotate %30 by %c1_i32 dim 1 : vector<24x128xf32>, i32 -> vector<24x128xf32>
    %c1_28 = arith.constant 1 : index
    %45 = memref.load %arg1[%c1_28] : memref<81xf32, #tpu.memory_space<smem>>
    %46 = vector.broadcast %45 : f32 to vector<24x128xf32>
    %47 = arith.mulf %46, %44 : vector<24x128xf32>
    %48 = arith.addf %35, %47 : vector<24x128xf32>
    %c28 = arith.constant 28 : index
    %49 = memref.load %arg1[%c28] : memref<81xf32, #tpu.memory_space<smem>>
    %50 = vector.broadcast %49 : f32 to vector<24x128xf32>
    %51 = arith.mulf %50, %44 : vector<24x128xf32>
    %52 = arith.addf %39, %51 : vector<24x128xf32>
    %c55 = arith.constant 55 : index
    %53 = memref.load %arg1[%c55] : memref<81xf32, #tpu.memory_space<smem>>
    %54 = vector.broadcast %53 : f32 to vector<24x128xf32>
    %55 = arith.mulf %54, %44 : vector<24x128xf32>
    %56 = arith.addf %43, %55 : vector<24x128xf32>
    %c2_29 = arith.constant 2 : index
    %57 = memref.load %arg1[%c2_29] : memref<81xf32, #tpu.memory_space<smem>>
    %58 = vector.broadcast %57 : f32 to vector<24x128xf32>
    %59 = arith.mulf %58, %30 : vector<24x128xf32>
    %60 = arith.addf %48, %59 : vector<24x128xf32>
    %c29 = arith.constant 29 : index
    %61 = memref.load %arg1[%c29] : memref<81xf32, #tpu.memory_space<smem>>
    %62 = vector.broadcast %61 : f32 to vector<24x128xf32>
    %63 = arith.mulf %62, %30 : vector<24x128xf32>
    %64 = arith.addf %52, %63 : vector<24x128xf32>
    %c56 = arith.constant 56 : index
    %65 = memref.load %arg1[%c56] : memref<81xf32, #tpu.memory_space<smem>>
    %66 = vector.broadcast %65 : f32 to vector<24x128xf32>
    %67 = arith.mulf %66, %30 : vector<24x128xf32>
    %68 = arith.addf %56, %67 : vector<24x128xf32>
    %c0_30 = arith.constant 0 : index
    %c1_31 = arith.constant 1 : index
    %c0_32 = arith.constant 0 : index
    %69 = vector.load %arg4[%c0_30, %c1_31, %c0_32] : memref<3x32x128xf32, #tpu.memory_space<vmem>>, vector<1x24x128xf32>
    %70 = vector.shape_cast %69 : vector<1x24x128xf32> to vector<24x128xf32>
    %c2_i32_33 = arith.constant 2 : i32
    %71 = tpu.dynamic_rotate %70 by %c2_i32_33 dim 1 : vector<24x128xf32>, i32 -> vector<24x128xf32>
    %c3 = arith.constant 3 : index
    %72 = memref.load %arg1[%c3] : memref<81xf32, #tpu.memory_space<smem>>
    %73 = vector.broadcast %72 : f32 to vector<24x128xf32>
    %74 = arith.mulf %73, %71 : vector<24x128xf32>
    %75 = arith.addf %60, %74 : vector<24x128xf32>
    %c30 = arith.constant 30 : index
    %76 = memref.load %arg1[%c30] : memref<81xf32, #tpu.memory_space<smem>>
    %77 = vector.broadcast %76 : f32 to vector<24x128xf32>
    %78 = arith.mulf %77, %71 : vector<24x128xf32>
    %79 = arith.addf %64, %78 : vector<24x128xf32>
    %c57 = arith.constant 57 : index
    %80 = memref.load %arg1[%c57] : memref<81xf32, #tpu.memory_space<smem>>
    %81 = vector.broadcast %80 : f32 to vector<24x128xf32>
    %82 = arith.mulf %81, %71 : vector<24x128xf32>
    %83 = arith.addf %68, %82 : vector<24x128xf32>
    %c1_i32_34 = arith.constant 1 : i32
    %84 = tpu.dynamic_rotate %70 by %c1_i32_34 dim 1 : vector<24x128xf32>, i32 -> vector<24x128xf32>
    %c4 = arith.constant 4 : index
    %85 = memref.load %arg1[%c4] : memref<81xf32, #tpu.memory_space<smem>>
    %86 = vector.broadcast %85 : f32 to vector<24x128xf32>
    %87 = arith.mulf %86, %84 : vector<24x128xf32>
    %88 = arith.addf %75, %87 : vector<24x128xf32>
    %c31 = arith.constant 31 : index
    %89 = memref.load %arg1[%c31] : memref<81xf32, #tpu.memory_space<smem>>
    %90 = vector.broadcast %89 : f32 to vector<24x128xf32>
    %91 = arith.mulf %90, %84 : vector<24x128xf32>
    %92 = arith.addf %79, %91 : vector<24x128xf32>
    %c58 = arith.constant 58 : index
    %93 = memref.load %arg1[%c58] : memref<81xf32, #tpu.memory_space<smem>>
    %94 = vector.broadcast %93 : f32 to vector<24x128xf32>
    %95 = arith.mulf %94, %84 : vector<24x128xf32>
    %96 = arith.addf %83, %95 : vector<24x128xf32>
    %c5 = arith.constant 5 : index
    %97 = memref.load %arg1[%c5] : memref<81xf32, #tpu.memory_space<smem>>
    %98 = vector.broadcast %97 : f32 to vector<24x128xf32>
    %99 = arith.mulf %98, %70 : vector<24x128xf32>
    %100 = arith.addf %88, %99 : vector<24x128xf32>
    %c32 = arith.constant 32 : index
    %101 = memref.load %arg1[%c32] : memref<81xf32, #tpu.memory_space<smem>>
    %102 = vector.broadcast %101 : f32 to vector<24x128xf32>
    %103 = arith.mulf %102, %70 : vector<24x128xf32>
    %104 = arith.addf %92, %103 : vector<24x128xf32>
    %c59 = arith.constant 59 : index
    %105 = memref.load %arg1[%c59] : memref<81xf32, #tpu.memory_space<smem>>
    %106 = vector.broadcast %105 : f32 to vector<24x128xf32>
    %107 = arith.mulf %106, %70 : vector<24x128xf32>
    %108 = arith.addf %96, %107 : vector<24x128xf32>
    %c0_35 = arith.constant 0 : index
    %c2_36 = arith.constant 2 : index
    %c0_37 = arith.constant 0 : index
    %109 = vector.load %arg4[%c0_35, %c2_36, %c0_37] : memref<3x32x128xf32, #tpu.memory_space<vmem>>, vector<1x24x128xf32>
    %110 = vector.shape_cast %109 : vector<1x24x128xf32> to vector<24x128xf32>
    %c2_i32_38 = arith.constant 2 : i32
    %111 = tpu.dynamic_rotate %110 by %c2_i32_38 dim 1 : vector<24x128xf32>, i32 -> vector<24x128xf32>
    %c6 = arith.constant 6 : index
    %112 = memref.load %arg1[%c6] : memref<81xf32, #tpu.memory_space<smem>>
    %113 = vector.broadcast %112 : f32 to vector<24x128xf32>
    %114 = arith.mulf %113, %111 : vector<24x128xf32>
    %115 = arith.addf %100, %114 : vector<24x128xf32>
    %c33 = arith.constant 33 : index
    %116 = memref.load %arg1[%c33] : memref<81xf32, #tpu.memory_space<smem>>
    %117 = vector.broadcast %116 : f32 to vector<24x128xf32>
    %118 = arith.mulf %117, %111 : vector<24x128xf32>
    %119 = arith.addf %104, %118 : vector<24x128xf32>
    %c60 = arith.constant 60 : index
    %120 = memref.load %arg1[%c60] : memref<81xf32, #tpu.memory_space<smem>>
    %121 = vector.broadcast %120 : f32 to vector<24x128xf32>
    %122 = arith.mulf %121, %111 : vector<24x128xf32>
    %123 = arith.addf %108, %122 : vector<24x128xf32>
    %c1_i32_39 = arith.constant 1 : i32
    %124 = tpu.dynamic_rotate %110 by %c1_i32_39 dim 1 : vector<24x128xf32>, i32 -> vector<24x128xf32>
    %c7 = arith.constant 7 : index
    %125 = memref.load %arg1[%c7] : memref<81xf32, #tpu.memory_space<smem>>
    %126 = vector.broadcast %125 : f32 to vector<24x128xf32>
    %127 = arith.mulf %126, %124 : vector<24x128xf32>
    %128 = arith.addf %115, %127 : vector<24x128xf32>
    %c34 = arith.constant 34 : index
    %129 = memref.load %arg1[%c34] : memref<81xf32, #tpu.memory_space<smem>>
    %130 = vector.broadcast %129 : f32 to vector<24x128xf32>
    %131 = arith.mulf %130, %124 : vector<24x128xf32>
    %132 = arith.addf %119, %131 : vector<24x128xf32>
    %c61 = arith.constant 61 : index
    %133 = memref.load %arg1[%c61] : memref<81xf32, #tpu.memory_space<smem>>
    %134 = vector.broadcast %133 : f32 to vector<24x128xf32>
    %135 = arith.mulf %134, %124 : vector<24x128xf32>
    %136 = arith.addf %123, %135 : vector<24x128xf32>
    %c8 = arith.constant 8 : index
    %137 = memref.load %arg1[%c8] : memref<81xf32, #tpu.memory_space<smem>>
    %138 = vector.broadcast %137 : f32 to vector<24x128xf32>
    %139 = arith.mulf %138, %110 : vector<24x128xf32>
    %140 = arith.addf %128, %139 : vector<24x128xf32>
    %c35 = arith.constant 35 : index
    %141 = memref.load %arg1[%c35] : memref<81xf32, #tpu.memory_space<smem>>
    %142 = vector.broadcast %141 : f32 to vector<24x128xf32>
    %143 = arith.mulf %142, %110 : vector<24x128xf32>
    %144 = arith.addf %132, %143 : vector<24x128xf32>
    %c62 = arith.constant 62 : index
    %145 = memref.load %arg1[%c62] : memref<81xf32, #tpu.memory_space<smem>>
    %146 = vector.broadcast %145 : f32 to vector<24x128xf32>
    %147 = arith.mulf %146, %110 : vector<24x128xf32>
    %148 = arith.addf %136, %147 : vector<24x128xf32>
    %c1_40 = arith.constant 1 : index
    %c0_41 = arith.constant 0 : index
    %c0_42 = arith.constant 0 : index
    %149 = vector.load %arg4[%c1_40, %c0_41, %c0_42] : memref<3x32x128xf32, #tpu.memory_space<vmem>>, vector<1x24x128xf32>
    %150 = vector.shape_cast %149 : vector<1x24x128xf32> to vector<24x128xf32>
    %c2_i32_43 = arith.constant 2 : i32
    %151 = tpu.dynamic_rotate %150 by %c2_i32_43 dim 1 : vector<24x128xf32>, i32 -> vector<24x128xf32>
    %c9 = arith.constant 9 : index
    %152 = memref.load %arg1[%c9] : memref<81xf32, #tpu.memory_space<smem>>
    %153 = vector.broadcast %152 : f32 to vector<24x128xf32>
    %154 = arith.mulf %153, %151 : vector<24x128xf32>
    %155 = arith.addf %140, %154 : vector<24x128xf32>
    %c36 = arith.constant 36 : index
    %156 = memref.load %arg1[%c36] : memref<81xf32, #tpu.memory_space<smem>>
    %157 = vector.broadcast %156 : f32 to vector<24x128xf32>
    %158 = arith.mulf %157, %151 : vector<24x128xf32>
    %159 = arith.addf %144, %158 : vector<24x128xf32>
    %c63 = arith.constant 63 : index
    %160 = memref.load %arg1[%c63] : memref<81xf32, #tpu.memory_space<smem>>
    %161 = vector.broadcast %160 : f32 to vector<24x128xf32>
    %162 = arith.mulf %161, %151 : vector<24x128xf32>
    %163 = arith.addf %148, %162 : vector<24x128xf32>
    %c1_i32_44 = arith.constant 1 : i32
    %164 = tpu.dynamic_rotate %150 by %c1_i32_44 dim 1 : vector<24x128xf32>, i32 -> vector<24x128xf32>
    %c10 = arith.constant 10 : index
    %165 = memref.load %arg1[%c10] : memref<81xf32, #tpu.memory_space<smem>>
    %166 = vector.broadcast %165 : f32 to vector<24x128xf32>
    %167 = arith.mulf %166, %164 : vector<24x128xf32>
    %168 = arith.addf %155, %167 : vector<24x128xf32>
    %c37 = arith.constant 37 : index
    %169 = memref.load %arg1[%c37] : memref<81xf32, #tpu.memory_space<smem>>
    %170 = vector.broadcast %169 : f32 to vector<24x128xf32>
    %171 = arith.mulf %170, %164 : vector<24x128xf32>
    %172 = arith.addf %159, %171 : vector<24x128xf32>
    %c64 = arith.constant 64 : index
    %173 = memref.load %arg1[%c64] : memref<81xf32, #tpu.memory_space<smem>>
    %174 = vector.broadcast %173 : f32 to vector<24x128xf32>
    %175 = arith.mulf %174, %164 : vector<24x128xf32>
    %176 = arith.addf %163, %175 : vector<24x128xf32>
    %c11 = arith.constant 11 : index
    %177 = memref.load %arg1[%c11] : memref<81xf32, #tpu.memory_space<smem>>
    %178 = vector.broadcast %177 : f32 to vector<24x128xf32>
    %179 = arith.mulf %178, %150 : vector<24x128xf32>
    %180 = arith.addf %168, %179 : vector<24x128xf32>
    %c38 = arith.constant 38 : index
    %181 = memref.load %arg1[%c38] : memref<81xf32, #tpu.memory_space<smem>>
    %182 = vector.broadcast %181 : f32 to vector<24x128xf32>
    %183 = arith.mulf %182, %150 : vector<24x128xf32>
    %184 = arith.addf %172, %183 : vector<24x128xf32>
    %c65 = arith.constant 65 : index
    %185 = memref.load %arg1[%c65] : memref<81xf32, #tpu.memory_space<smem>>
    %186 = vector.broadcast %185 : f32 to vector<24x128xf32>
    %187 = arith.mulf %186, %150 : vector<24x128xf32>
    %188 = arith.addf %176, %187 : vector<24x128xf32>
    %c1_45 = arith.constant 1 : index
    %c1_46 = arith.constant 1 : index
    %c0_47 = arith.constant 0 : index
    %189 = vector.load %arg4[%c1_45, %c1_46, %c0_47] : memref<3x32x128xf32, #tpu.memory_space<vmem>>, vector<1x24x128xf32>
    %190 = vector.shape_cast %189 : vector<1x24x128xf32> to vector<24x128xf32>
    %c2_i32_48 = arith.constant 2 : i32
    %191 = tpu.dynamic_rotate %190 by %c2_i32_48 dim 1 : vector<24x128xf32>, i32 -> vector<24x128xf32>
    %c12 = arith.constant 12 : index
    %192 = memref.load %arg1[%c12] : memref<81xf32, #tpu.memory_space<smem>>
    %193 = vector.broadcast %192 : f32 to vector<24x128xf32>
    %194 = arith.mulf %193, %191 : vector<24x128xf32>
    %195 = arith.addf %180, %194 : vector<24x128xf32>
    %c39 = arith.constant 39 : index
    %196 = memref.load %arg1[%c39] : memref<81xf32, #tpu.memory_space<smem>>
    %197 = vector.broadcast %196 : f32 to vector<24x128xf32>
    %198 = arith.mulf %197, %191 : vector<24x128xf32>
    %199 = arith.addf %184, %198 : vector<24x128xf32>
    %c66 = arith.constant 66 : index
    %200 = memref.load %arg1[%c66] : memref<81xf32, #tpu.memory_space<smem>>
    %201 = vector.broadcast %200 : f32 to vector<24x128xf32>
    %202 = arith.mulf %201, %191 : vector<24x128xf32>
    %203 = arith.addf %188, %202 : vector<24x128xf32>
    %c1_i32_49 = arith.constant 1 : i32
    %204 = tpu.dynamic_rotate %190 by %c1_i32_49 dim 1 : vector<24x128xf32>, i32 -> vector<24x128xf32>
    %c13 = arith.constant 13 : index
    %205 = memref.load %arg1[%c13] : memref<81xf32, #tpu.memory_space<smem>>
    %206 = vector.broadcast %205 : f32 to vector<24x128xf32>
    %207 = arith.mulf %206, %204 : vector<24x128xf32>
    %208 = arith.addf %195, %207 : vector<24x128xf32>
    %c40 = arith.constant 40 : index
    %209 = memref.load %arg1[%c40] : memref<81xf32, #tpu.memory_space<smem>>
    %210 = vector.broadcast %209 : f32 to vector<24x128xf32>
    %211 = arith.mulf %210, %204 : vector<24x128xf32>
    %212 = arith.addf %199, %211 : vector<24x128xf32>
    %c67 = arith.constant 67 : index
    %213 = memref.load %arg1[%c67] : memref<81xf32, #tpu.memory_space<smem>>
    %214 = vector.broadcast %213 : f32 to vector<24x128xf32>
    %215 = arith.mulf %214, %204 : vector<24x128xf32>
    %216 = arith.addf %203, %215 : vector<24x128xf32>
    %c14 = arith.constant 14 : index
    %217 = memref.load %arg1[%c14] : memref<81xf32, #tpu.memory_space<smem>>
    %218 = vector.broadcast %217 : f32 to vector<24x128xf32>
    %219 = arith.mulf %218, %190 : vector<24x128xf32>
    %220 = arith.addf %208, %219 : vector<24x128xf32>
    %c41 = arith.constant 41 : index
    %221 = memref.load %arg1[%c41] : memref<81xf32, #tpu.memory_space<smem>>
    %222 = vector.broadcast %221 : f32 to vector<24x128xf32>
    %223 = arith.mulf %222, %190 : vector<24x128xf32>
    %224 = arith.addf %212, %223 : vector<24x128xf32>
    %c68 = arith.constant 68 : index
    %225 = memref.load %arg1[%c68] : memref<81xf32, #tpu.memory_space<smem>>
    %226 = vector.broadcast %225 : f32 to vector<24x128xf32>
    %227 = arith.mulf %226, %190 : vector<24x128xf32>
    %228 = arith.addf %216, %227 : vector<24x128xf32>
    %c1_50 = arith.constant 1 : index
    %c2_51 = arith.constant 2 : index
    %c0_52 = arith.constant 0 : index
    %229 = vector.load %arg4[%c1_50, %c2_51, %c0_52] : memref<3x32x128xf32, #tpu.memory_space<vmem>>, vector<1x24x128xf32>
    %230 = vector.shape_cast %229 : vector<1x24x128xf32> to vector<24x128xf32>
    %c2_i32_53 = arith.constant 2 : i32
    %231 = tpu.dynamic_rotate %230 by %c2_i32_53 dim 1 : vector<24x128xf32>, i32 -> vector<24x128xf32>
    %c15 = arith.constant 15 : index
    %232 = memref.load %arg1[%c15] : memref<81xf32, #tpu.memory_space<smem>>
    %233 = vector.broadcast %232 : f32 to vector<24x128xf32>
    %234 = arith.mulf %233, %231 : vector<24x128xf32>
    %235 = arith.addf %220, %234 : vector<24x128xf32>
    %c42 = arith.constant 42 : index
    %236 = memref.load %arg1[%c42] : memref<81xf32, #tpu.memory_space<smem>>
    %237 = vector.broadcast %236 : f32 to vector<24x128xf32>
    %238 = arith.mulf %237, %231 : vector<24x128xf32>
    %239 = arith.addf %224, %238 : vector<24x128xf32>
    %c69 = arith.constant 69 : index
    %240 = memref.load %arg1[%c69] : memref<81xf32, #tpu.memory_space<smem>>
    %241 = vector.broadcast %240 : f32 to vector<24x128xf32>
    %242 = arith.mulf %241, %231 : vector<24x128xf32>
    %243 = arith.addf %228, %242 : vector<24x128xf32>
    %c1_i32_54 = arith.constant 1 : i32
    %244 = tpu.dynamic_rotate %230 by %c1_i32_54 dim 1 : vector<24x128xf32>, i32 -> vector<24x128xf32>
    %c16 = arith.constant 16 : index
    %245 = memref.load %arg1[%c16] : memref<81xf32, #tpu.memory_space<smem>>
    %246 = vector.broadcast %245 : f32 to vector<24x128xf32>
    %247 = arith.mulf %246, %244 : vector<24x128xf32>
    %248 = arith.addf %235, %247 : vector<24x128xf32>
    %c43 = arith.constant 43 : index
    %249 = memref.load %arg1[%c43] : memref<81xf32, #tpu.memory_space<smem>>
    %250 = vector.broadcast %249 : f32 to vector<24x128xf32>
    %251 = arith.mulf %250, %244 : vector<24x128xf32>
    %252 = arith.addf %239, %251 : vector<24x128xf32>
    %c70 = arith.constant 70 : index
    %253 = memref.load %arg1[%c70] : memref<81xf32, #tpu.memory_space<smem>>
    %254 = vector.broadcast %253 : f32 to vector<24x128xf32>
    %255 = arith.mulf %254, %244 : vector<24x128xf32>
    %256 = arith.addf %243, %255 : vector<24x128xf32>
    %c17 = arith.constant 17 : index
    %257 = memref.load %arg1[%c17] : memref<81xf32, #tpu.memory_space<smem>>
    %258 = vector.broadcast %257 : f32 to vector<24x128xf32>
    %259 = arith.mulf %258, %230 : vector<24x128xf32>
    %260 = arith.addf %248, %259 : vector<24x128xf32>
    %c44 = arith.constant 44 : index
    %261 = memref.load %arg1[%c44] : memref<81xf32, #tpu.memory_space<smem>>
    %262 = vector.broadcast %261 : f32 to vector<24x128xf32>
    %263 = arith.mulf %262, %230 : vector<24x128xf32>
    %264 = arith.addf %252, %263 : vector<24x128xf32>
    %c71 = arith.constant 71 : index
    %265 = memref.load %arg1[%c71] : memref<81xf32, #tpu.memory_space<smem>>
    %266 = vector.broadcast %265 : f32 to vector<24x128xf32>
    %267 = arith.mulf %266, %230 : vector<24x128xf32>
    %268 = arith.addf %256, %267 : vector<24x128xf32>
    %c2_55 = arith.constant 2 : index
    %c0_56 = arith.constant 0 : index
    %c0_57 = arith.constant 0 : index
    %269 = vector.load %arg4[%c2_55, %c0_56, %c0_57] : memref<3x32x128xf32, #tpu.memory_space<vmem>>, vector<1x24x128xf32>
    %270 = vector.shape_cast %269 : vector<1x24x128xf32> to vector<24x128xf32>
    %c2_i32_58 = arith.constant 2 : i32
    %271 = tpu.dynamic_rotate %270 by %c2_i32_58 dim 1 : vector<24x128xf32>, i32 -> vector<24x128xf32>
    %c18 = arith.constant 18 : index
    %272 = memref.load %arg1[%c18] : memref<81xf32, #tpu.memory_space<smem>>
    %273 = vector.broadcast %272 : f32 to vector<24x128xf32>
    %274 = arith.mulf %273, %271 : vector<24x128xf32>
    %275 = arith.addf %260, %274 : vector<24x128xf32>
    %c45 = arith.constant 45 : index
    %276 = memref.load %arg1[%c45] : memref<81xf32, #tpu.memory_space<smem>>
    %277 = vector.broadcast %276 : f32 to vector<24x128xf32>
    %278 = arith.mulf %277, %271 : vector<24x128xf32>
    %279 = arith.addf %264, %278 : vector<24x128xf32>
    %c72 = arith.constant 72 : index
    %280 = memref.load %arg1[%c72] : memref<81xf32, #tpu.memory_space<smem>>
    %281 = vector.broadcast %280 : f32 to vector<24x128xf32>
    %282 = arith.mulf %281, %271 : vector<24x128xf32>
    %283 = arith.addf %268, %282 : vector<24x128xf32>
    %c1_i32_59 = arith.constant 1 : i32
    %284 = tpu.dynamic_rotate %270 by %c1_i32_59 dim 1 : vector<24x128xf32>, i32 -> vector<24x128xf32>
    %c19 = arith.constant 19 : index
    %285 = memref.load %arg1[%c19] : memref<81xf32, #tpu.memory_space<smem>>
    %286 = vector.broadcast %285 : f32 to vector<24x128xf32>
    %287 = arith.mulf %286, %284 : vector<24x128xf32>
    %288 = arith.addf %275, %287 : vector<24x128xf32>
    %c46 = arith.constant 46 : index
    %289 = memref.load %arg1[%c46] : memref<81xf32, #tpu.memory_space<smem>>
    %290 = vector.broadcast %289 : f32 to vector<24x128xf32>
    %291 = arith.mulf %290, %284 : vector<24x128xf32>
    %292 = arith.addf %279, %291 : vector<24x128xf32>
    %c73 = arith.constant 73 : index
    %293 = memref.load %arg1[%c73] : memref<81xf32, #tpu.memory_space<smem>>
    %294 = vector.broadcast %293 : f32 to vector<24x128xf32>
    %295 = arith.mulf %294, %284 : vector<24x128xf32>
    %296 = arith.addf %283, %295 : vector<24x128xf32>
    %c20 = arith.constant 20 : index
    %297 = memref.load %arg1[%c20] : memref<81xf32, #tpu.memory_space<smem>>
    %298 = vector.broadcast %297 : f32 to vector<24x128xf32>
    %299 = arith.mulf %298, %270 : vector<24x128xf32>
    %300 = arith.addf %288, %299 : vector<24x128xf32>
    %c47 = arith.constant 47 : index
    %301 = memref.load %arg1[%c47] : memref<81xf32, #tpu.memory_space<smem>>
    %302 = vector.broadcast %301 : f32 to vector<24x128xf32>
    %303 = arith.mulf %302, %270 : vector<24x128xf32>
    %304 = arith.addf %292, %303 : vector<24x128xf32>
    %c74 = arith.constant 74 : index
    %305 = memref.load %arg1[%c74] : memref<81xf32, #tpu.memory_space<smem>>
    %306 = vector.broadcast %305 : f32 to vector<24x128xf32>
    %307 = arith.mulf %306, %270 : vector<24x128xf32>
    %308 = arith.addf %296, %307 : vector<24x128xf32>
    %c2_60 = arith.constant 2 : index
    %c1_61 = arith.constant 1 : index
    %c0_62 = arith.constant 0 : index
    %309 = vector.load %arg4[%c2_60, %c1_61, %c0_62] : memref<3x32x128xf32, #tpu.memory_space<vmem>>, vector<1x24x128xf32>
    %310 = vector.shape_cast %309 : vector<1x24x128xf32> to vector<24x128xf32>
    %c2_i32_63 = arith.constant 2 : i32
    %311 = tpu.dynamic_rotate %310 by %c2_i32_63 dim 1 : vector<24x128xf32>, i32 -> vector<24x128xf32>
    %c21 = arith.constant 21 : index
    %312 = memref.load %arg1[%c21] : memref<81xf32, #tpu.memory_space<smem>>
    %313 = vector.broadcast %312 : f32 to vector<24x128xf32>
    %314 = arith.mulf %313, %311 : vector<24x128xf32>
    %315 = arith.addf %300, %314 : vector<24x128xf32>
    %c48 = arith.constant 48 : index
    %316 = memref.load %arg1[%c48] : memref<81xf32, #tpu.memory_space<smem>>
    %317 = vector.broadcast %316 : f32 to vector<24x128xf32>
    %318 = arith.mulf %317, %311 : vector<24x128xf32>
    %319 = arith.addf %304, %318 : vector<24x128xf32>
    %c75 = arith.constant 75 : index
    %320 = memref.load %arg1[%c75] : memref<81xf32, #tpu.memory_space<smem>>
    %321 = vector.broadcast %320 : f32 to vector<24x128xf32>
    %322 = arith.mulf %321, %311 : vector<24x128xf32>
    %323 = arith.addf %308, %322 : vector<24x128xf32>
    %c1_i32_64 = arith.constant 1 : i32
    %324 = tpu.dynamic_rotate %310 by %c1_i32_64 dim 1 : vector<24x128xf32>, i32 -> vector<24x128xf32>
    %c22 = arith.constant 22 : index
    %325 = memref.load %arg1[%c22] : memref<81xf32, #tpu.memory_space<smem>>
    %326 = vector.broadcast %325 : f32 to vector<24x128xf32>
    %327 = arith.mulf %326, %324 : vector<24x128xf32>
    %328 = arith.addf %315, %327 : vector<24x128xf32>
    %c49 = arith.constant 49 : index
    %329 = memref.load %arg1[%c49] : memref<81xf32, #tpu.memory_space<smem>>
    %330 = vector.broadcast %329 : f32 to vector<24x128xf32>
    %331 = arith.mulf %330, %324 : vector<24x128xf32>
    %332 = arith.addf %319, %331 : vector<24x128xf32>
    %c76 = arith.constant 76 : index
    %333 = memref.load %arg1[%c76] : memref<81xf32, #tpu.memory_space<smem>>
    %334 = vector.broadcast %333 : f32 to vector<24x128xf32>
    %335 = arith.mulf %334, %324 : vector<24x128xf32>
    %336 = arith.addf %323, %335 : vector<24x128xf32>
    %c23 = arith.constant 23 : index
    %337 = memref.load %arg1[%c23] : memref<81xf32, #tpu.memory_space<smem>>
    %338 = vector.broadcast %337 : f32 to vector<24x128xf32>
    %339 = arith.mulf %338, %310 : vector<24x128xf32>
    %340 = arith.addf %328, %339 : vector<24x128xf32>
    %c50 = arith.constant 50 : index
    %341 = memref.load %arg1[%c50] : memref<81xf32, #tpu.memory_space<smem>>
    %342 = vector.broadcast %341 : f32 to vector<24x128xf32>
    %343 = arith.mulf %342, %310 : vector<24x128xf32>
    %344 = arith.addf %332, %343 : vector<24x128xf32>
    %c77 = arith.constant 77 : index
    %345 = memref.load %arg1[%c77] : memref<81xf32, #tpu.memory_space<smem>>
    %346 = vector.broadcast %345 : f32 to vector<24x128xf32>
    %347 = arith.mulf %346, %310 : vector<24x128xf32>
    %348 = arith.addf %336, %347 : vector<24x128xf32>
    %c2_65 = arith.constant 2 : index
    %c2_66 = arith.constant 2 : index
    %c0_67 = arith.constant 0 : index
    %349 = vector.load %arg4[%c2_65, %c2_66, %c0_67] : memref<3x32x128xf32, #tpu.memory_space<vmem>>, vector<1x24x128xf32>
    %350 = vector.shape_cast %349 : vector<1x24x128xf32> to vector<24x128xf32>
    %c2_i32_68 = arith.constant 2 : i32
    %351 = tpu.dynamic_rotate %350 by %c2_i32_68 dim 1 : vector<24x128xf32>, i32 -> vector<24x128xf32>
    %c24 = arith.constant 24 : index
    %352 = memref.load %arg1[%c24] : memref<81xf32, #tpu.memory_space<smem>>
    %353 = vector.broadcast %352 : f32 to vector<24x128xf32>
    %354 = arith.mulf %353, %351 : vector<24x128xf32>
    %355 = arith.addf %340, %354 : vector<24x128xf32>
    %c51 = arith.constant 51 : index
    %356 = memref.load %arg1[%c51] : memref<81xf32, #tpu.memory_space<smem>>
    %357 = vector.broadcast %356 : f32 to vector<24x128xf32>
    %358 = arith.mulf %357, %351 : vector<24x128xf32>
    %359 = arith.addf %344, %358 : vector<24x128xf32>
    %c78 = arith.constant 78 : index
    %360 = memref.load %arg1[%c78] : memref<81xf32, #tpu.memory_space<smem>>
    %361 = vector.broadcast %360 : f32 to vector<24x128xf32>
    %362 = arith.mulf %361, %351 : vector<24x128xf32>
    %363 = arith.addf %348, %362 : vector<24x128xf32>
    %c1_i32_69 = arith.constant 1 : i32
    %364 = tpu.dynamic_rotate %350 by %c1_i32_69 dim 1 : vector<24x128xf32>, i32 -> vector<24x128xf32>
    %c25 = arith.constant 25 : index
    %365 = memref.load %arg1[%c25] : memref<81xf32, #tpu.memory_space<smem>>
    %366 = vector.broadcast %365 : f32 to vector<24x128xf32>
    %367 = arith.mulf %366, %364 : vector<24x128xf32>
    %368 = arith.addf %355, %367 : vector<24x128xf32>
    %c52 = arith.constant 52 : index
    %369 = memref.load %arg1[%c52] : memref<81xf32, #tpu.memory_space<smem>>
    %370 = vector.broadcast %369 : f32 to vector<24x128xf32>
    %371 = arith.mulf %370, %364 : vector<24x128xf32>
    %372 = arith.addf %359, %371 : vector<24x128xf32>
    %c79 = arith.constant 79 : index
    %373 = memref.load %arg1[%c79] : memref<81xf32, #tpu.memory_space<smem>>
    %374 = vector.broadcast %373 : f32 to vector<24x128xf32>
    %375 = arith.mulf %374, %364 : vector<24x128xf32>
    %376 = arith.addf %363, %375 : vector<24x128xf32>
    %c26 = arith.constant 26 : index
    %377 = memref.load %arg1[%c26] : memref<81xf32, #tpu.memory_space<smem>>
    %378 = vector.broadcast %377 : f32 to vector<24x128xf32>
    %379 = arith.mulf %378, %350 : vector<24x128xf32>
    %380 = arith.addf %368, %379 : vector<24x128xf32>
    %c53 = arith.constant 53 : index
    %381 = memref.load %arg1[%c53] : memref<81xf32, #tpu.memory_space<smem>>
    %382 = vector.broadcast %381 : f32 to vector<24x128xf32>
    %383 = arith.mulf %382, %350 : vector<24x128xf32>
    %384 = arith.addf %372, %383 : vector<24x128xf32>
    %c80 = arith.constant 80 : index
    %385 = memref.load %arg1[%c80] : memref<81xf32, #tpu.memory_space<smem>>
    %386 = vector.broadcast %385 : f32 to vector<24x128xf32>
    %387 = arith.mulf %386, %350 : vector<24x128xf32>
    %388 = arith.addf %376, %387 : vector<24x128xf32>
    %cst_70 = arith.constant 0.000000e+00 : f32
    %389 = vector.broadcast %cst_70 : f32 to vector<24x128xf32>
    %390 = arith.maximumf %380, %389 : vector<24x128xf32>
    %cst_71 = arith.constant 0.000000e+00 : f32
    %391 = vector.broadcast %cst_71 : f32 to vector<24x128xf32>
    %392 = arith.maximumf %384, %391 : vector<24x128xf32>
    %393 = arith.addf %390, %392 : vector<24x128xf32>
    %cst_72 = arith.constant 0.000000e+00 : f32
    %394 = vector.broadcast %cst_72 : f32 to vector<24x128xf32>
    %395 = arith.maximumf %388, %394 : vector<24x128xf32>
    %396 = arith.addf %393, %395 : vector<24x128xf32>
    %397 = tpu.iota {dimensions = array<i32: 0>} : vector<24x128xi32>
    %398 = tpu.iota {dimensions = array<i32: 1>} : vector<24x128xi32>
    %c18_i32 = arith.constant 18 : i32
    %399 = vector.broadcast %c18_i32 : i32 to vector<24x128xi32>
    %400 = arith.cmpi slt, %397, %399 : vector<24x128xi32>
    %c18_i32_73 = arith.constant 18 : i32
    %401 = vector.broadcast %c18_i32_73 : i32 to vector<24x128xi32>
    %402 = arith.cmpi slt, %398, %401 : vector<24x128xi32>
    %403 = arith.andi %400, %402 : vector<24x128xi1>
    %cst_74 = arith.constant 0.000000e+00 : f32
    %404 = vector.broadcast %cst_74 : f32 to vector<24x128xf32>
    %405 = arith.select %403, %396, %404 : vector<24x128xi1>, vector<24x128xf32>
    %406 = vector.shape_cast %405 : vector<24x128xf32> to vector<1x24x128xf32>
    %cst_75 = arith.constant dense<0.000000e+00> : vector<1xf32>
    %407 = vector.multi_reduction <add>, %406, %cst_75 [1, 2] : vector<1x24x128xf32> to vector<1xf32>
    %408 = vector.shape_cast %407 : vector<1xf32> to vector<1x1x1xf32>
    %409 = vector.extract %408[0, 0, 0] : f32 from vector<1x1x1xf32>
    %cst_76 = arith.constant 9.720000e+02 : f32
    %410 = arith.divf %409, %cst_76 : f32
    %cst_77 = arith.constant 0.000000e+00 : f32
    %411 = arith.subf %cst_77, %410 : f32
    %412 = math.exp %411 : f32
    %cst_78 = arith.constant 1.000000e+00 : f32
    %413 = arith.addf %cst_78, %412 : f32
    %cst_79 = arith.constant 1.000000e+00 : f32
    %414 = arith.divf %cst_79, %413 : f32
    %c0_80 = arith.constant 0 : index
    %c0_81 = arith.constant 0 : index
    %415 = memref.load %arg3[%c0_80, %c0_81] : memref<1x1xf32, #tpu.memory_space<smem>>
    memref.store %414, %arg3[%c0_80, %c0_81] : memref<1x1xf32, #tpu.memory_space<smem>>
    return
  }
}

</mosaic_0001>

<bundles_post_ra>
// kernel: model_forward.1
= control target key start
LH: loop header
LB: loop body
LE: loop exit
PB: predicated region body
PF: predicated region fallthrough
CT: control target
= control target key end

     0   :  { %8 = vsyncpa [#allocation4], 0  ;;  %s2348_s0 = inlined_call_operand.hbm [shape: f32[3,16,16], index: 0, kind: input, shape index: {}]   ;;  %s2349_s1 = inlined_call_operand.vmem [shape: f32[81], index: 1, kind: input, shape index: {}]   ;;  %s2350_s2 = inlined_call_operand.vmem [shape: f32[3], index: 2, kind: input, shape index: {}]   ;;  %s2351_s3 = inlined_call_operand.hbm [shape: f32[1,1], index: 3, kind: output, shape index: {}]  }
   0x1   :  { %9 = vsyncpa [#allocation6], 0 }
   0x2   :  { %10 = vsyncpa [#allocation9], 0 }
   0x3   :  { %11 = vsyncpa [#allocation5], 0  ;;  %s16_s14 = sshll.u32 %s2348_s0, 4  ;;  %s1162_s15 = smov [#allocation3]   ;;  %s17_s14 = int_to_ptr.hbm [resolvable:$true] %s16_s14 }
   0x4   :  { %s18_s16 = sshll.u32 %s1162_s15, 4  ;;  %s30_s19 = sshll.u32 %s2349_s1, 4  ;;  %s19_s16 = int_to_ptr.vmem [resolvable:$true] %s18_s16  ;;  %s31_s19 = int_to_ptr.vmem [resolvable:$true] %s30_s19 }
   0x5   :  { %s1163_s20 = smov 128   ;;  %s1164_s21 = smov 8  }
   0x6   :  { %24 = dma.hbm_to_vmem [thread:$0]  %s17_s14, 768, %s19_s16, [#allocation4], %s1163_s20, %s1163_s20, %s1164_s21  }
   0x7   :  { %s1165_s22 = smov [#allocation7]   ;;  %s39_s25 = sshll.u32 %s2350_s2, 4  ;;  %s40_s25 = int_to_ptr.vmem [resolvable:$true] %s39_s25 }
   0x8   :  { %33 = dma.vmem_to_smem %s31_s19, 16, %s1165_s22, [#allocation6]  }
   0x9   :  { %s1166_s0 = smov [#allocation8]  }
   0xa   :  { %42 = dma.vmem_to_smem %s40_s25, 16, %s1166_s0, [#allocation9]  }
   0xb   :  { %1154 = dma.done.wait [#allocation4], 768  }
   0xc   :  { %1155 = vsyncadd [#allocation4], 4294966528 }
   0xd   :  { %1156 = dma.done.wait [#allocation6], 16  }
   0xe   :  { %1157 = vsyncadd [#allocation6], 4294967280 }
   0xf   :  { %1158 = dma.done.wait [#allocation9], 16  }
  0x10   :  { %1159 = vsyncadd [#allocation9], 4294967280 }
  0x11   :  { %55 = sfence }
  0x12   :  { %v69_v0 = vld [vmem:[#allocation3 + $0x8] sm:$0xff]  ;;  %vm70_vm0 = vcmask 130048   ;;  %v1167_v1 = vmov 0.0   ;;  %s1168_s1 = smov 2   ;;  %v68_v3 = vld [vmem:[#allocation3] sm:$0xff]  ;;  %s1169_s2 = smov 1  }
  0x13   :  { %57 = vst [vmem:[#allocation2 + $0x8] sm:$0xff] %v1167_v1  ;;  %v75_v7 = vld [vmem:[#allocation3 + $0x18] sm:$0xff]  ;;  %v74_v8 = vld [vmem:[#allocation3 + $0x10] sm:$0xff]  ;;  %v80_v19 = vld [vmem:[#allocation3 + $0x20] sm:$0xff]  ;;  %s974_s26 = sld [smem:[#allocation7 + $0x1]] }
  0x14   :  { %58 = vst [vmem:[#allocation2 + $0x10] sm:$0xff] %v1167_v1  ;;  %v81_v20 = vld [vmem:[#allocation3 + $0x28] sm:$0xff]  ;;  %s975_s27 = sld [smem:[#allocation7 + $0x1c]] }
  0x15   :  { %72 = vst.msk [vmem:[#allocation2 + $0xa] sm:$0xff] %vm70_vm0, %v69_v0  ;;  %s976_s28 = sld [smem:[#allocation7 + $0x37]] }
  0x16   :  { %56 = vst [vmem:[#allocation2] sm:$0xff] %v1167_v1  ;;  %s980_s29 = sld [smem:[#allocation7 + $0x3]] }
  0x17   :  { %59 = vst [vmem:[#allocation2 + $0x18] sm:$0xff] %v1167_v1  ;;  %s981_s30 = sld [smem:[#allocation7 + $0x1e]] }
  0x18   :  { %60 = vst [vmem:[#allocation2 + $0x20] sm:$0xff] %v1167_v1  ;;  %s982_s4 = sld [smem:[#allocation7 + $0x39]] }
  0x19   :  { %61 = vst [vmem:[#allocation2 + $0x28] sm:$0xff] %v1167_v1  ;;  %s1314_s5 = sld [smem:[#allocation8]]  ;;  %v1326_v32 = vstv %s974_s26 }
  0x1a   :  { %62 = vst [vmem:[#allocation2 + $0x30] sm:$0xff] %v1167_v1  ;;  %s103_s6 = sld [smem:[#allocation7]]  ;;  %v1328_v33 = vstv %s975_s27 }
  0x1b   :  { %63 = vst [vmem:[#allocation2 + $0x38] sm:$0xff] %v1167_v1  ;;  %s972_s7 = sld [smem:[#allocation7 + $0x1b]]  ;;  %v1330_v34 = vstv %s976_s28 }
  0x1c   :  { %v1202_v2 = vld [vmem:[#allocation2 + $0x10] sm:$0xff]  ;;  %64 = vst [vmem:[#allocation2 + $0x40] sm:$0xff] %v1167_v1  ;;  %s973_s8 = sld [smem:[#allocation7 + $0x36]]  ;;  %v1334_v36 = vstv %s980_s29 }
  0x1d   :  { %101 = vrot.lane.b32.xlu1 %v1202_v2, %s1168_s1  ;;  %65 = vst [vmem:[#allocation2 + $0x48] sm:$0xff] %v1167_v1  ;;  %v1237_v11 = vld [vmem:[#allocation2 + $0xa] sm:$0xff]  ;;  %s977_s9 = sld [smem:[#allocation7 + $0x2]]  ;;  %v1336_v37 = vstv %s981_s30 }
  0x1e   :  { %66 = vst [vmem:[#allocation2 + $0x50] sm:$0xff] %v1167_v1  ;;  %v1227_v9 = vld [vmem:[#allocation2 + $0x11] sm:$0xff]  ;;  %s978_s10 = sld [smem:[#allocation7 + $0x1d]]  ;;  %v1338_v38 = vstv %s982_s4 }
  0x1f   :  { %67 = vst [vmem:[#allocation2 + $0x58] sm:$0xff] %v1167_v1  ;;  %v1243_v12 = vld [vmem:[#allocation2 + $0x12] sm:$0xff]  ;;  %s979_s11 = sld [smem:[#allocation7 + $0x38]]  ;;  %v1365_v49 = vstv %s1314_s5 }
  0x20   :  { %71 = vst.msk [vmem:[#allocation2 + $0x2] sm:$0xff] %vm70_vm0, %v68_v3  ;;  %s1321_s12 = sld [smem:[#allocation8 + $0x1]]  ;;  %v1340_v39 = vstv %s103_s6 }
  0x21   :  { %78 = vst.msk [vmem:[#allocation2 + $0x2a] sm:$0xff] %vm70_vm0, %v75_v7  ;;  %s1324_s13 = sld [smem:[#allocation8 + $0x2]]  ;;  %v1344_v40 = vstv %s972_s7 }
  0x22   :  { %77 = vst.msk [vmem:[#allocation2 + $0x22] sm:$0xff] %vm70_vm0, %v74_v8  ;;  %v531_v13 = vld [vmem:[#allocation2 + $0x32] sm:$0xff]  ;;  %s1342_s14 = sld [smem:[#allocation7 + $0x4]]  ;;  %v1346_v41 = vstv %s973_s8 }
  0x23   :  { %v1070_v14 = vpack.i.bf16 %v531_v13, %v1243_v12  ;;  %83 = vst.msk [vmem:[#allocation2 + $0x42] sm:$0xff] %vm70_vm0, %v80_v19  ;;  %v1348_v42 = vstv %s977_s9  ;;  %s1352_s15 = sld [smem:[#allocation7 + $0x1f]] }
  0x24   :  { %84 = vst.msk [vmem:[#allocation2 + $0x4a] sm:$0xff] %vm70_vm0, %v81_v20  ;;  %v1350_v43 = vstv %s978_s10  ;;  %s1359_s16 = sld [smem:[#allocation7 + $0x3a]]  ;;  %v161_v55 = vmul.f32 %v1348_v42, %v1202_v2 }
  0x25   :  { %v1357_v48 = vstv %s979_s11  ;;  %s1370_s17 = sld [smem:[#allocation7 + $0x5]]  ;;  %v169_v56 = vmul.f32 %v1350_v43, %v1202_v2 }
  0x26   :  { %v1374_v53 = vstv %s1321_s12  ;;  %s1383_s18 = sld [smem:[#allocation7 + $0x20]]  ;;  %v177_v61 = vmul.f32 %v1357_v48, %v1202_v2 }
  0x27   :  { %v1207_v4 = vld [vmem:[#allocation2 + $0x8] sm:$0xff]  ;;  %v1209_v5 = vld [vmem:[#allocation2] sm:$0xff]  ;;  %v1377_v54 = vstv %s1324_s13  ;;  %s988_s19 = sld [smem:[#allocation7 + $0x3b]] }
  0x28   :  { %129 = vrot.lane.b32.xlu2 %v1207_v4, %s1169_s2  ;;  %97 = vrot.lane.b32.xlu0 %v1209_v5, %s1168_s1  ;;  %v1217_v6 = vld [vmem:[#allocation2 + $0x9] sm:$0xff]  ;;  %v1229_v10 = vld [vmem:[#allocation2 + $0x1] sm:$0xff]  ;;  %v1282_v22 = vld [vmem:[#allocation2 + $0x31] sm:$0xff]  ;;  %s1393_s20 = sld [smem:[#allocation7 + $0x6]] }
  0x29   :  { %127 = vrot.lane.b32.xlu1 %v1209_v5, %s1169_s2  ;;  %v1248_v15 = vld [vmem:[#allocation2 + $0x2] sm:$0xff]  ;;  %v1262_v17 = vld [vmem:[#allocation2 + $0x30] sm:$0xff]  ;;  %s1401_s21 = sld [smem:[#allocation7 + $0x21]] }
  0x2a   :  { %v1255_v16 = vld [vmem:[#allocation2 + $0x28] sm:$0xff]  ;;  %v1264_v18 = vld [vmem:[#allocation2 + $0x20] sm:$0xff]  ;;  %s1409_s22 = sld [smem:[#allocation7 + $0x3c]] }
  0x2b   :  { %2390 = vst [vmem:[#allocation15_spill] sm:$0xff] %v1255_v16  ;;  %v1274_v21 = vld [vmem:[#allocation2 + $0x29] sm:$0xff]  ;;  %v1284_v23 = vld [vmem:[#allocation2 + $0x21] sm:$0xff]  ;;  %v705_v8 = vld [vmem:[#allocation2 + $0x51] sm:$0xff]  ;;  %s1412_s23 = sld [smem:[#allocation7 + $0x7]] }
  0x2c   :  { %2391 = vst [vmem:[#allocation16_spill] sm:$0xff] %v1264_v18  ;;  %v1292_v24 = vld [vmem:[#allocation2 + $0x2a] sm:$0xff]  ;;  %v1300_v25 = vld [vmem:[#allocation2 + $0x22] sm:$0xff]  ;;  %s1422_s24 = sld [smem:[#allocation7 + $0x8]] }
  0x2d   :  { %2392 = vst [vmem:[#allocation17_spill] sm:$0xff] %v1274_v21  ;;  %v616_v26 = vld [vmem:[#allocation2 + $0x40] sm:$0xff]  ;;  %v1307_v27 = vld [vmem:[#allocation2 + $0x48] sm:$0xff]  ;;  %v618_v29 = vld [vmem:[#allocation2 + $0x50] sm:$0xff]  ;;  %s1428_s25 = sld [smem:[#allocation7 + $0x23]] }
  0x2e   :  { %2393 = vst [vmem:[#allocation18_spill] sm:$0xff] %v1284_v23  ;;  %v703_v30 = vld [vmem:[#allocation2 + $0x41] sm:$0xff]  ;;  %v1332_v35 = vld [vmem:[#allocation2 + $0x49] sm:$0xff]  ;;  %s1434_s0 = sld [smem:[#allocation7 + $0x22]] }
  0x2f   :  { %2394 = vst [vmem:[#allocation19_spill] sm:$0xff] %v1292_v24  ;;  %v790_v20 = vld [vmem:[#allocation2 + $0x42] sm:$0xff]  ;;  %s1445_s26 = sld [smem:[#allocation7 + $0x3e]] }
  0x30   :  { %131 = vrot.lane.b32.xlu2 %v1202_v2, %s1169_s2  ;;  %99 = vrot.lane.b32.xlu0 %v1207_v4, %s1168_s1  ;;  %2395 = vst [vmem:[#allocation20_spill] sm:$0xff] %v1300_v25  ;;  %v1396_v2 = vstv %s1342_s14  ;;  %s1454_s27 = sld [smem:[#allocation7 + $0x3d]] }
  0x31   :  { %186 = vrot.lane.b32.xlu1 %v1217_v6, %s1168_s1  ;;  %2396 = vst [vmem:[#allocation21_spill] sm:$0xff] %v1307_v27  ;;  %s1466_s28 = sld [smem:[#allocation7 + $0x9]] }
  0x32   :  { %2397 = vst [vmem:[#allocation22_spill] sm:$0xff] %v1332_v35  ;;  %s1473_s29 = sld [smem:[#allocation7 + $0x24]] }
  0x33   :  { %s1484_s30 = sld [smem:[#allocation7 + $0x3f]] }
  0x34   :  { %s1497_s4 = sld [smem:[#allocation7 + $0xa]] }
  0x35   :  { %s1517_s5 = sld [smem:[#allocation7 + $0x25]] }
  0x36   :  { %s1527_s6 = sld [smem:[#allocation7 + $0x40]] }
  0x37   :  { %s1541_s7 = sld [smem:[#allocation7 + $0xb]] }
  0x38   :  { %188 = vrot.lane.b32.xlu2 %v1227_v9, %s1168_s1  ;;  %184 = vrot.lane.b32.xlu0 %v1229_v10, %s1168_s1  ;;  %s1545_s8 = sld [smem:[#allocation7 + $0x26]] }
  0x39   :  { %216 = vrot.lane.b32.xlu1 %v1217_v6, %s1169_s2  ;;  %s1558_s9 = sld [smem:[#allocation7 + $0x41]] }
  0x3a   :  { %s1578_s10 = sld [smem:[#allocation7 + $0x27]] }
  0x3b   :  { %s1583_s11 = sld [smem:[#allocation7 + $0x42]] }
  0x3c   :  { %s1599_s12 = sld [smem:[#allocation7 + $0xd]] }
  0x3d   :  { %s1605_s13 = sld [smem:[#allocation7 + $0xe]] }
  0x3e   :  { %s1617_s14 = sld [smem:[#allocation7 + $0x29]] }
  0x40   :  { %218 = vrot.lane.b32.xlu2 %v1227_v9, %s1169_s2  ;;  %214 = vrot.lane.b32.xlu0 %v1229_v10, %s1169_s2 }
  0x41   :  { %273 = vrot.lane.b32.xlu1 %v1237_v11, %s1168_s1 }
  0x48   :  { %1071 = vrot.lane.b32.xlu2 %v1070_v14, %s1168_s1  ;;  %271 = vrot.lane.b32.xlu0 %v1248_v15, %s1168_s1 }
  0x49   :  { %303 = vrot.lane.b32.xlu1 %v1237_v11, %s1169_s2 }
  0x50   :  { %1076 = vrot.lane.b32.xlu2 %v1070_v14, %s1169_s2  ;;  %301 = vrot.lane.b32.xlu0 %v1248_v15, %s1169_s2 }
  0x51   :  { %360 = vrot.lane.b32.xlu1 %v1255_v16, %s1168_s1 }
  0x58   :  { %362 = vrot.lane.b32.xlu2 %v1262_v17, %s1168_s1  ;;  %358 = vrot.lane.b32.xlu0 %v1264_v18, %s1168_s1 }
  0x59   :  { %390 = vrot.lane.b32.xlu1 %v1255_v16, %s1169_s2 }
  0x60   :  { %392 = vrot.lane.b32.xlu2 %v1262_v17, %s1169_s2  ;;  %388 = vrot.lane.b32.xlu0 %v1264_v18, %s1169_s2 }
  0x61   :  { %447 = vrot.lane.b32.xlu1 %v1274_v21, %s1168_s1 }
  0x68   :  { %449 = vrot.lane.b32.xlu2 %v1282_v22, %s1168_s1  ;;  %445 = vrot.lane.b32.xlu0 %v1284_v23, %s1168_s1 }
  0x69   :  { %477 = vrot.lane.b32.xlu1 %v1274_v21, %s1169_s2 }
  0x70   :  { %479 = vrot.lane.b32.xlu2 %v1282_v22, %s1169_s2  ;;  %475 = vrot.lane.b32.xlu0 %v1284_v23, %s1169_s2 }
  0x71   :  { %534 = vrot.lane.b32.xlu1 %v1292_v24, %s1168_s1 }
  0x78   :  { %532 = vrot.lane.b32.xlu0 %v1300_v25, %s1168_s1  ;;  %562 = vrot.lane.b32.xlu2 %v1300_v25, %s1169_s2 }
  0x79   :  { %619 = vrot.lane.b32.xlu1 %v616_v26, %s1168_s1 }
  0x80   :  { %564 = vrot.lane.b32.xlu0 %v1292_v24, %s1169_s2  ;;  %621 = vrot.lane.b32.xlu2 %v1307_v27, %s1168_s1 }
  0x81   :  { %649 = vrot.lane.b32.xlu1 %v616_v26, %s1169_s2  ;;  %v1399_v26 = vstv %s1352_s15  ;;  %s1626_s15 = sld [smem:[#allocation7 + $0x28]] }
  0x82   :  { %v1316_v28 = vpop.permute.xlu2 %129 }
  0x88   :  { %623 = vrot.lane.b32.xlu0 %v618_v29, %s1168_s1  ;;  %651 = vrot.lane.b32.xlu2 %v1307_v27, %s1169_s2 }
  0x89   :  { %706 = vrot.lane.b32.xlu1 %v703_v30, %s1168_s1 }
  0x8a   :  { %v132_v31 = vpop.permute.xlu2 %131 }
  0x8b   :  { %v137_v44 = vmul.f32 %v1326_v32, %v132_v31  ;;  %v145_v45 = vmul.f32 %v1328_v33, %v132_v31  ;;  %v153_v46 = vmul.f32 %v1330_v34, %v132_v31 }
  0x8f   :  { %v102_v47 = vpop.permute.xlu1 %101 }
  0x90   :  { %653 = vrot.lane.b32.xlu0 %v618_v29, %s1169_s2  ;;  %708 = vrot.lane.b32.xlu2 %v1332_v35, %s1168_s1  ;;  %v107_v50 = vmul.f32 %v1340_v39, %v102_v47  ;;  %v115_v51 = vmul.f32 %v1344_v40, %v102_v47  ;;  %v123_v52 = vmul.f32 %v1346_v41, %v102_v47  ;;  %v1420_v47 = vstv %s988_s19  ;;  %s1728_s19 = sld [smem:[#allocation7 + $0x46]] }
  0x91   :  { %736 = vrot.lane.b32.xlu1 %v703_v30, %s1169_s2 }
  0x92   :  { %v189_v57 = vpop.permute.xlu2 %188  ;;  %v110_v58 = vadd.f32 %v107_v50, %v1365_v49  ;;  %v118_v59 = vadd.f32 %v115_v51, %v1374_v53  ;;  %v126_v60 = vadd.f32 %v123_v52, %v1377_v54 }
  0x93   :  { %v194_v62 = vmul.f32 %v1334_v36, %v189_v57  ;;  %v202_v63 = vmul.f32 %v1336_v37, %v189_v57  ;;  %v210_v0 = vmul.f32 %v1338_v38, %v189_v57 }
  0x94   :  { %v140_v1 = vadd.f32 %v137_v44, %v110_v58  ;;  %v148_v3 = vadd.f32 %v145_v45, %v118_v59  ;;  %v156_v7 = vadd.f32 %v153_v46, %v126_v60  ;;  %v1407_v44 = vstv %s1359_s16  ;;  %s1648_s16 = sld [smem:[#allocation7 + $0x44]] }
  0x95   :  { %v1415_v45 = vstv %s1370_s17  ;;  %v1418_v46 = vstv %s1383_s18  ;;  %s1714_s17 = sld [smem:[#allocation7 + $0x10]] }
  0x96   :  { %v164_v13 = vadd.f32 %v161_v55, %v140_v1  ;;  %v172_v14 = vadd.f32 %v169_v56, %v148_v3  ;;  %v180_v19 = vadd.f32 %v177_v61, %v156_v7  ;;  %v1443_v7 = vld [vmem:[#allocation2 + $0x4a] sm:$0xff]  ;;  %s1718_s18 = sld [smem:[#allocation7 + $0x2b]] }
  0x97   :  { %2398 = vst [vmem:[#allocation23_spill] sm:$0xff] %v1443_v7 }
  0x98   :  { %710 = vrot.lane.b32.xlu0 %v705_v8, %s1168_s1  ;;  %738 = vrot.lane.b32.xlu2 %v1332_v35, %s1169_s2  ;;  %v197_v29 = vadd.f32 %v194_v62, %v164_v13  ;;  %v205_v30 = vadd.f32 %v202_v63, %v172_v14  ;;  %v213_v31 = vadd.f32 %v210_v0, %v180_v19 }
  0x99   :  { %793 = vrot.lane.b32.xlu1 %v790_v20, %s1168_s1  ;;  %v1449_v13 = vmul.f32 %v1415_v45, %v1227_v9 }
  0x9a   :  { %v219_v50 = vpop.permute.xlu2 %218  ;;  %v98_v51 = vpop.permute.xlu0 %97 }
  0x9b   :  { %v224_v52 = vmul.f32 %v1396_v2, %v219_v50  ;;  %v232_v55 = vmul.f32 %v1399_v26, %v219_v50  ;;  %v240_v56 = vmul.f32 %v1407_v44, %v219_v50  ;;  %v105_v57 = vmul.f32 %v1340_v39, %v98_v51  ;;  %v128_v58 = vpop.permute.xlu1 %127 }
  0x9c   :  { %v113_v59 = vmul.f32 %v1344_v40, %v98_v51  ;;  %v121_v60 = vmul.f32 %v1346_v41, %v98_v51  ;;  %v135_v61 = vmul.f32 %v1326_v32, %v128_v58  ;;  %v143_v62 = vmul.f32 %v1328_v33, %v128_v58 }
  0x9d   :  { %v1436_v63 = vadd.f32 %v224_v52, %v197_v29  ;;  %v1438_v0 = vadd.f32 %v232_v55, %v205_v30  ;;  %v1440_v1 = vadd.f32 %v240_v56, %v213_v31  ;;  %v108_v3 = vadd.f32 %v105_v57, %v1365_v49 }
  0x9e   :  { %v116_v14 = vadd.f32 %v113_v59, %v1374_v53  ;;  %v124_v19 = vadd.f32 %v121_v60, %v1377_v54  ;;  %v151_v29 = vmul.f32 %v1330_v34, %v128_v58  ;;  %v136_v30 = vmul.f32 %v1326_v32, %v1316_v28 }
  0x9f   :  { %v1460_v31 = vmul.f32 %v1418_v46, %v1227_v9  ;;  %v1464_v50 = vmul.f32 %v1420_v47, %v1227_v9  ;;  %v138_v51 = vadd.f32 %v135_v61, %v108_v3  ;;  %v144_v52 = vmul.f32 %v1328_v33, %v1316_v28 }
  0xa0   :  { %740 = vrot.lane.b32.xlu0 %v705_v8, %s1169_s2  ;;  %795 = vrot.lane.b32.xlu2 %v1443_v7, %s1168_s1  ;;  %v146_v32 = vadd.f32 %v143_v62, %v116_v14  ;;  %v154_v55 = vadd.f32 %v151_v29, %v124_v19  ;;  %v152_v9 = vmul.f32 %v1330_v34, %v1316_v28  ;;  %v1495_v59 = vstv %s1393_s20  ;;  %v792_v14 = vld [vmem:[#allocation2 + $0x52] sm:$0xff]  ;;  %s1768_s20 = sld [smem:[#allocation7 + $0xf]] }
  0xa1   :  { %823 = vrot.lane.b32.xlu1 %v790_v20, %s1169_s2  ;;  %v159_v33 = vmul.f32 %v1348_v42, %v1209_v5  ;;  %v167_v8 = vmul.f32 %v1350_v43, %v1209_v5  ;;  %v175_v56 = vmul.f32 %v1357_v48, %v1209_v5  ;;  %v160_v34 = vmul.f32 %v1348_v42, %v1207_v4 }
  0xa2   :  { %v1486_v57 = vpop.permute.xlu2 %1071  ;;  %v100_v28 = vpop.permute.xlu0 %99  ;;  %v168_v20 = vmul.f32 %v1350_v43, %v1207_v4  ;;  %v176_v58 = vmul.f32 %v1357_v48, %v1207_v4  ;;  %v1502_v62 = vstv %s1422_s24  ;;  %v1505_v42 = vstv %s1428_s25  ;;  %s1821_s24 = sld [smem:[#allocation7 + $0x2d]] }
  0xa3   :  { %v106_v5 = vmul.f32 %v1340_v39, %v100_v28  ;;  %v114_v60 = vmul.f32 %v1344_v40, %v100_v28  ;;  %v187_v61 = vpop.permute.xlu1 %186  ;;  %v122_v43 = vmul.f32 %v1346_v41, %v100_v28  ;;  %v1509_v3 = vstv %s1401_s21  ;;  %s1774_s21 = sld [smem:[#allocation7 + $0x2a]] }
  0xa4   :  { %v1512_v4 = vstv %s1409_s22  ;;  %v1515_v48 = vstv %s1412_s23  ;;  %v1522_v19 = vstv %s1434_s0  ;;  %v1525_v29 = vstv %s1445_s26  ;;  %s1785_s22 = sld [smem:[#allocation7 + $0x45]] }
  0xa5   :  { %v109_v39 = vadd.f32 %v106_v5, %v1365_v49  ;;  %v117_v40 = vadd.f32 %v114_v60, %v1374_v53  ;;  %v125_v41 = vadd.f32 %v122_v43, %v1377_v54  ;;  %v1531_v28 = vstv %s1454_s27  ;;  %s1819_s23 = sld [smem:[#allocation7 + $0x12]] }
  0xa6   :  { %v1535_v35 = vmul.f32 %v1502_v62, %v1243_v12  ;;  %v1539_v49 = vmul.f32 %v1505_v42, %v1243_v12  ;;  %v193_v60 = vmul.f32 %v1334_v36, %v187_v61  ;;  %v201_v54 = vmul.f32 %v1336_v37, %v187_v61  ;;  %s1826_s25 = sld [smem:[#allocation7 + $0x48]] }
  0xa7   :  { %v139_v53 = vadd.f32 %v136_v30, %v109_v39  ;;  %v147_v5 = vadd.f32 %v144_v52, %v117_v40  ;;  %v155_v43 = vadd.f32 %v152_v9, %v125_v41  ;;  %v209_v27 = vmul.f32 %v1338_v38, %v187_v61  ;;  %s1833_s0 = sld [smem:[#allocation7 + $0x13]] }
  0xa8   :  { %797 = vrot.lane.b32.xlu0 %v792_v14, %s1168_s1  ;;  %825 = vrot.lane.b32.xlu2 %v1443_v7, %s1169_s2  ;;  %v1553_v24 = vmul.f32 %v1525_v29, %v1243_v12  ;;  %v1556_v30 = vstv %s1466_s28  ;;  %v1561_v40 = vstv %s1473_s29  ;;  %v162_v61 = vadd.f32 %v159_v33, %v138_v51  ;;  %s1571_s1 = sld [smem:[#allocation7 + $0xc]] }
  0xa9   :  { %v163_v52 = vadd.f32 %v160_v34, %v139_v53  ;;  %v171_v39 = vadd.f32 %v168_v20, %v147_v5  ;;  %v1564_v9 = vstv %s1484_s30  ;;  %v179_v25 = vadd.f32 %v176_v58, %v155_v43  ;;  %s1841_s26 = sld [smem:[#allocation7 + $0x2e]] }
  0xaa   :  { %v1566_v41 = vpop.permute.xlu2 %1076  ;;  %v185_v7 = vpop.permute.xlu0 %184  ;;  %v170_v23 = vadd.f32 %v167_v8, %v146_v32  ;;  %v1569_v12 = vstv %s1497_s4  ;;  %v1073_v21 = vunpack.i.l.bf16 %v1486_v57  ;;  %v178_v53 = vadd.f32 %v175_v56, %v154_v55  ;;  %s1865_s27 = sld [smem:[#allocation7 + $0x49]] }
  0xab   :  { %v1574_v34 = vadd.f32 %v193_v60, %v163_v52  ;;  %v1576_v20 = vadd.f32 %v201_v54, %v171_v39  ;;  %v217_v5 = vpop.permute.xlu1 %216  ;;  %v212_v58 = vadd.f32 %v209_v27, %v179_v25  ;;  %v192_v43 = vmul.f32 %v1334_v36, %v185_v7  ;;  %s1911_s28 = sld [smem:[#allocation7 + $0x15]] }
  0xac   :  { %v200_v51 = vmul.f32 %v1336_v37, %v185_v7  ;;  %v208_v32 = vmul.f32 %v1338_v38, %v185_v7  ;;  %v1586_v33 = vstv %s1517_s5  ;;  %v1589_v8 = vstv %s1527_s6  ;;  %s1916_s29 = sld [smem:[#allocation7 + $0x30]] }
  0xad   :  { %v1593_v55 = vmul.f32 %v1415_v45, %v1217_v6  ;;  %v1597_v25 = vmul.f32 %v1418_v46, %v1217_v6  ;;  %v195_v27 = vadd.f32 %v192_v43, %v162_v61  ;;  %v1603_v38 = vmul.f32 %v1420_v47, %v1217_v6  ;;  %s1921_s30 = sld [smem:[#allocation7 + $0x4b]] }
  0xae   :  { %v203_v36 = vadd.f32 %v200_v51, %v170_v23  ;;  %v211_v37 = vadd.f32 %v208_v32, %v178_v53  ;;  %v251_v7 = vadd.f32 %v1449_v13, %v1436_v63  ;;  %v259_v56 = vadd.f32 %v1460_v31, %v1438_v0  ;;  %s1927_s4 = sld [smem:[#allocation7 + $0x11]] }
  0xaf   :  { %v1612_v60 = vstv %s1541_s7  ;;  %v1615_v54 = vstv %s1545_s8  ;;  %v281_v23 = vmul.f32 %v1073_v21, %v1495_v59  ;;  %v289_v6 = vmul.f32 %v1073_v21, %v1509_v3  ;;  %s1949_s5 = sld [smem:[#allocation7 + $0x2c]] }
  0xb0   :  { %2399 = vst [vmem:[#allocation24_spill] sm:$0xff] %v1612_v60  ;;  %827 = vrot.lane.b32.xlu0 %v792_v14, %s1169_s2  ;;  %v239_v52 = vmul.f32 %v1407_v44, %v217_v5  ;;  %v1624_v39 = vstv %s1558_s9  ;;  %v267_v63 = vadd.f32 %v1464_v50, %v1440_v1  ;;  %v1078_v0 = vunpack.i.l.bf16 %v1566_v41  ;;  %s1634_s2 = sld [smem:[#allocation7 + $0x43]] }
  0xb1   :  { %2400 = vst [vmem:[#allocation25_spill] sm:$0xff] %v1615_v54  ;;  %v297_v13 = vmul.f32 %v1073_v21, %v1512_v4  ;;  %v246_v31 = vmul.f32 %v1415_v45, %v1229_v10  ;;  %v254_v43 = vmul.f32 %v1418_v46, %v1229_v10  ;;  %v262_v1 = vmul.f32 %v1420_v47, %v1229_v10  ;;  %s1953_s6 = sld [smem:[#allocation7 + $0x47]] }
  0xb2   :  { %2401 = vst [vmem:[#allocation26_spill] sm:$0xff] %v1624_v39  ;;  %v1636_v14 = vpop.permute.xlu2 %362  ;;  %v1638_v61 = vadd.f32 %v239_v52, %v212_v58  ;;  %v215_v53 = vpop.permute.xlu0 %214  ;;  %v1646_v50 = vmul.f32 %v1612_v60, %v1262_v17  ;;  %v1655_v58 = vmul.f32 %v1615_v54, %v1262_v17  ;;  %v1659_v46 = vmul.f32 %v1624_v39, %v1262_v17  ;;  %s1961_s7 = sld [smem:[#allocation7 + $0x14]] }
  0xb3   :  { %v222_v21 = vmul.f32 %v1396_v2, %v215_v53  ;;  %v1651_v45 = vpop.permute.xlu1 %273  ;;  %v1662_v10 = vstv %s1571_s1  ;;  %v284_v47 = vadd.f32 %v281_v23, %v251_v7  ;;  %v292_v51 = vadd.f32 %v289_v6, %v259_v56  ;;  %s1970_s8 = sld [smem:[#allocation7 + $0x2f]] }
  0xb4   :  { %2402 = vst [vmem:[#allocation27_spill] sm:$0xff] %v1659_v46  ;;  %v230_v32 = vmul.f32 %v1399_v26, %v215_v53  ;;  %v238_v52 = vmul.f32 %v1407_v44, %v215_v53  ;;  %v300_v18 = vadd.f32 %v297_v13, %v267_v63  ;;  %v311_v54 = vmul.f32 %v1078_v0, %v1515_v48  ;;  %s1984_s9 = sld [smem:[#allocation7 + $0x4a]] }
  0xb5   :  { %v319_v60 = vmul.f32 %v1078_v0, %v1522_v19  ;;  %v225_v17 = vadd.f32 %v222_v21, %v195_v27  ;;  %v327_v39 = vmul.f32 %v1078_v0, %v1531_v28  ;;  %v1670_v7 = vstv %s1605_s13  ;;  %s2004_s1 = sld [smem:[#allocation7 + $0x16]] }
  0xb6   :  { %v233_v16 = vadd.f32 %v230_v32, %v203_v36  ;;  %v241_v46 = vadd.f32 %v238_v52, %v211_v37  ;;  %2403 = vst [vmem:[#allocation28_spill] sm:$0xff] %v1670_v7  ;;  %v223_v56 = vmul.f32 %v1396_v2, %v217_v5  ;;  %v231_v23 = vmul.f32 %v1399_v26, %v217_v5  ;;  %s2063_s13 = sld [smem:[#allocation7 + $0x32]] }
  0xb7   :  { %v1675_v44 = vstv %s1578_s10  ;;  %v1678_v6 = vstv %s1617_s14  ;;  %v1681_v63 = vunpack.i.h.bf16 %v1486_v57  ;;  %v1684_v13 = vstv %s1583_s11  ;;  %s2022_s10 = sld [smem:[#allocation7 + $0x31]] }
  0xb8   :  { %2404 = vst [vmem:[#allocation29_spill] sm:$0xff] %v1678_v6  ;;  %v1687_v27 = vstv %s1599_s12  ;;  %v1690_v36 = vstv %s1626_s15  ;;  %v314_v37 = vadd.f32 %v311_v54, %v284_v47  ;;  %v322_v0 = vadd.f32 %v319_v60, %v292_v51  ;;  %s2030_s11 = sld [smem:[#allocation7 + $0x4c]] }
  0xb9   :  { %2405 = vst [vmem:[#allocation30_spill] sm:$0xff] %v1681_v63  ;;  %v1693_v53 = vstv %s1634_s2  ;;  %v1697_v2 = vmul.f32 %v1670_v7, %v1282_v22  ;;  %v1700_v26 = vunpack.i.h.bf16 %v1566_v41  ;;  %v330_v5 = vadd.f32 %v327_v39, %v300_v18  ;;  %s2051_s12 = sld [smem:[#allocation7 + $0x17]] }
  0xba   :  { %v393_v57 = vpop.permute.xlu2 %392  ;;  %v272_v21 = vpop.permute.xlu0 %271  ;;  %v1704_v32 = vmul.f32 %v1678_v6, %v1282_v22  ;;  %v1707_v52 = vstv %s1648_s16  ;;  %v226_v60 = vadd.f32 %v223_v56, %v1574_v34  ;;  %v234_v54 = vadd.f32 %v231_v23, %v1576_v20  ;;  %s2073_s14 = sld [smem:[#allocation7 + $0x4d]] }
  0xbb   :  { %v249_v47 = vadd.f32 %v246_v31, %v225_v17  ;;  %v279_v51 = vmul.f32 %v1495_v59, %v272_v21  ;;  %v1712_v7 = vpop.permute.xlu1 %303  ;;  %v257_v18 = vadd.f32 %v254_v43, %v233_v16  ;;  %v265_v41 = vadd.f32 %v262_v1, %v241_v46  ;;  %s2086_s15 = sld [smem:[#allocation7 + $0x18]] }
  0xbc   :  { %v287_v39 = vmul.f32 %v1509_v3, %v272_v21  ;;  %v295_v6 = vmul.f32 %v1512_v4, %v272_v21  ;;  %v338_v63 = vadd.f32 %v1535_v35, %v314_v37  ;;  %v346_v34 = vadd.f32 %v1539_v49, %v322_v0  ;;  %s2101_s2 = sld [smem:[#allocation7 + $0x33]] }
  0xbd   :  { %v1722_v20 = vadd.f32 %v279_v51, %v249_v47  ;;  %v1726_v31 = vmul.f32 %v1707_v52, %v1282_v22  ;;  %v368_v16 = vmul.f32 %v1556_v30, %v1636_v14  ;;  %v376_v43 = vmul.f32 %v1561_v40, %v1636_v14  ;;  %s2111_s16 = sld [smem:[#allocation7 + $0x4e]] }
  0xbe   :  { %v1734_v1 = vadd.f32 %v287_v39, %v257_v18  ;;  %v1736_v46 = vadd.f32 %v295_v6, %v265_v41  ;;  %v354_v35 = vadd.f32 %v1553_v24, %v330_v5  ;;  %v384_v49 = vmul.f32 %v1564_v9, %v1636_v14 }
  0xbf   :  { %v280_v22 = vmul.f32 %v1495_v59, %v1651_v45  ;;  %v334_v17 = vmul.f32 %v1502_v62, %v1237_v11  ;;  %v398_v56 = vmul.f32 %v1569_v12, %v393_v57  ;;  %v406_v23 = vmul.f32 %v1586_v33, %v393_v57 }
  0xc0   :  { %v250_v37 = vadd.f32 %v1593_v55, %v226_v60  ;;  %v288_v6 = vmul.f32 %v1509_v3, %v1651_v45  ;;  %v414_v24 = vmul.f32 %v1589_v8, %v393_v57  ;;  %v258_v0 = vadd.f32 %v1597_v25, %v234_v54 }
  0xc1   :  { %v342_v14 = vmul.f32 %v1505_v42, %v1237_v11  ;;  %v1756_v59 = vmul.f32 %v1525_v29, %v1237_v11  ;;  %v371_v5 = vadd.f32 %v368_v16, %v338_v63  ;;  %v379_v21 = vadd.f32 %v376_v43, %v346_v34 }
  0xc2   :  { %v450_v47 = vpop.permute.xlu2 %449  ;;  %v310_v55 = vmul.f32 %v1515_v48, %v1712_v7  ;;  %v318_v3 = vmul.f32 %v1522_v19, %v1712_v7  ;;  %v302_v25 = vpop.permute.xlu0 %301  ;;  %v387_v57 = vadd.f32 %v384_v49, %v354_v35  ;;  %v266_v60 = vadd.f32 %v1603_v38, %v1638_v61 }
  0xc3   :  { %v283_v54 = vadd.f32 %v280_v22, %v250_v37  ;;  %v296_v11 = vmul.f32 %v1512_v4, %v1651_v45  ;;  %v1766_v63 = vpop.permute.xlu1 %360  ;;  %v401_v51 = vadd.f32 %v398_v56, %v371_v5  ;;  %v409_v18 = vadd.f32 %v406_v23, %v379_v21 }
  0xc4   :  { %v291_v41 = vadd.f32 %v288_v6, %v258_v0  ;;  %v1772_v39 = vmul.f32 %v1502_v62, %v1248_v15  ;;  %v417_v34 = vadd.f32 %v414_v24, %v387_v57  ;;  %v1777_v16 = vstv %s1714_s17  ;;  %v2406_v0 = vld [vmem:[#allocation27_spill] sm:$0xff]  ;;  %s2130_s17 = sld [smem:[#allocation7 + $0x19]] }
  0xc5   :  { %v1780_v38 = vstv %s1718_s18  ;;  %v1783_v61 = vstv %s1728_s19  ;;  %v455_v4 = vmul.f32 %v1662_v10, %v450_v47  ;;  %v463_v45 = vmul.f32 %v1675_v44, %v450_v47  ;;  %s2146_s18 = sld [smem:[#allocation7 + $0x34]] }
  0xc6   :  { %v313_v43 = vadd.f32 %v310_v55, %v283_v54  ;;  %v321_v35 = vadd.f32 %v318_v3, %v291_v41  ;;  %v299_v49 = vadd.f32 %v296_v11, %v266_v60  ;;  %v471_v62 = vmul.f32 %v1684_v13, %v450_v47  ;;  %v2409_v41 = vld [vmem:[#allocation25_spill] sm:$0xff]  ;;  %s2154_s19 = sld [smem:[#allocation7 + $0x1a]] }
  0xc7   :  { %v1792_v22 = vmul.f32 %v1505_v42, %v1248_v15  ;;  %v1796_v56 = vmul.f32 %v1525_v29, %v1248_v15  ;;  %v425_v23 = vadd.f32 %v1646_v50, %v401_v51  ;;  %v433_v37 = vadd.f32 %v1655_v58, %v409_v18  ;;  %v2407_v29 = vld [vmem:[#allocation15_spill] sm:$0xff]  ;;  %v2408_v50 = vld [vmem:[#allocation24_spill] sm:$0xff] }
  0xc8   :  { %v1802_v6 = vmul.f32 %v1700_v26, %v1777_v16  ;;  %v1806_v24 = vmul.f32 %v1700_v26, %v1780_v38  ;;  %v441_v5 = vadd.f32 %v2406_v0, %v417_v34  ;;  %v326_v42 = vmul.f32 %v1531_v28, %v1712_v7 }
  0xc9   :  { %v1813_v15 = vmul.f32 %v1700_v26, %v1783_v61  ;;  %v1817_v58 = vmul.f32 %v2408_v50, %v2407_v29  ;;  %v458_v21 = vadd.f32 %v455_v4, %v425_v23  ;;  %v466_v47 = vadd.f32 %v463_v45, %v433_v37  ;;  %v2410_v37 = vld [vmem:[#allocation26_spill] sm:$0xff] }
  0xca   :  { %v480_v55 = vpop.permute.xlu2 %479  ;;  %v337_v3 = vadd.f32 %v334_v17, %v313_v43  ;;  %v345_v57 = vadd.f32 %v342_v14, %v321_v35  ;;  %v359_v60 = vpop.permute.xlu0 %358  ;;  %v474_v7 = vadd.f32 %v471_v62, %v441_v5  ;;  %v309_v18 = vmul.f32 %v1515_v48, %v302_v25 }
  0xcb   :  { %v485_v26 = vmul.f32 %v1687_v27, %v480_v55  ;;  %v493_v54 = vmul.f32 %v1690_v36, %v480_v55  ;;  %v501_v11 = vmul.f32 %v1693_v53, %v480_v55  ;;  %v391_v51 = vpop.permute.xlu1 %390  ;;  %v1831_v17 = vmul.f32 %v2409_v41, %v2407_v29 }
  0xcc   :  { %v1836_v14 = vstv %s1768_s20  ;;  %v1839_v34 = vstv %s1774_s21  ;;  %v1844_v35 = vstv %s1785_s22  ;;  %v329_v62 = vadd.f32 %v326_v42, %v299_v49  ;;  %s2171_s20 = sld [smem:[#allocation7 + $0x35]] }
  0xcd   :  { %v488_v4 = vadd.f32 %v485_v26, %v458_v21  ;;  %v496_v45 = vadd.f32 %v493_v54, %v466_v47  ;;  %v504_v43 = vadd.f32 %v501_v11, %v474_v7  ;;  %v317_v48 = vmul.f32 %v1522_v19, %v302_v25  ;;  %v2411_v47 = vld [vmem:[#allocation30_spill] sm:$0xff]  ;;  %v2412_v26 = vld [vmem:[#allocation16_spill] sm:$0xff]  ;;  %s2183_s21 = sld [smem:[#allocation7 + $0x4f]] }
  0xce   :  { %v325_v23 = vmul.f32 %v1531_v28, %v302_v25  ;;  %v1850_v0 = vmul.f32 %v2410_v37, %v2407_v29  ;;  %v542_v7 = vmul.f32 %v2411_v47, %v1836_v14  ;;  %v1859_v49 = vmul.f32 %v2408_v50, %v2412_v26  ;;  %s2207_s22 = sld [smem:[#allocation7 + $0x50]] }
  0xcf   :  { %v512_v5 = vadd.f32 %v1697_v2, %v488_v4  ;;  %v520_v55 = vadd.f32 %v1704_v32, %v496_v45  ;;  %v528_v21 = vadd.f32 %v1726_v31, %v504_v43  ;;  %v1863_v19 = vmul.f32 %v2409_v41, %v2412_v26 }
  0xd0   :  { %v550_v28 = vmul.f32 %v2411_v47, %v1839_v34  ;;  %v558_v2 = vmul.f32 %v2411_v47, %v1844_v35  ;;  %v312_v32 = vadd.f32 %v309_v18, %v1722_v20  ;;  %v367_v31 = vmul.f32 %v1556_v30, %v1766_v63 }
  0xd1   :  { %v1876_v25 = vmul.f32 %v2410_v37, %v2412_v26  ;;  %v1878_v42 = vadd.f32 %v542_v7, %v512_v5  ;;  %v320_v29 = vadd.f32 %v317_v48, %v1734_v1  ;;  %v375_v50 = vmul.f32 %v1561_v40, %v1766_v63 }
  0xd2   :  { %v389_v54 = vpop.permute.xlu0 %388  ;;  %v1883_v11 = vpop.permute.xlu2 %562  ;;  %v1885_v20 = vadd.f32 %v550_v28, %v520_v55  ;;  %v1887_v18 = vadd.f32 %v558_v2, %v528_v21  ;;  %v328_v41 = vadd.f32 %v325_v23, %v1736_v46  ;;  %v397_v4 = vmul.f32 %v1569_v12, %v391_v51 }
  0xd3   :  { %v448_v45 = vpop.permute.xlu1 %447  ;;  %v1892_v43 = vstv %s1819_s23  ;;  %v1895_v1 = vstv %s1821_s24  ;;  %v353_v48 = vadd.f32 %v1756_v59, %v329_v62  ;;  %v383_v37 = vmul.f32 %v1564_v9, %v1766_v63 }
  0xd4   :  { %v405_v5 = vmul.f32 %v1586_v33, %v391_v51  ;;  %v1902_v55 = vstv %s1826_s25  ;;  %v370_v21 = vadd.f32 %v367_v31, %v337_v3  ;;  %v336_v47 = vadd.f32 %v1772_v39, %v312_v32  ;;  %v2415_v31 = vld [vmem:[#allocation28_spill] sm:$0xff] }
  0xd5   :  { %2413 = vst [vmem:[#allocation27_spill] sm:$0xff] %v1902_v55  ;;  %v1906_v46 = vstv %s1833_s0  ;;  %v1909_v23 = vstv %s1841_s26  ;;  %v378_v7 = vadd.f32 %v375_v50, %v345_v57  ;;  %v344_v59 = vadd.f32 %v1792_v22, %v320_v29 }
  0xd6   :  { %v366_v62 = vmul.f32 %v1556_v30, %v359_v60  ;;  %v374_v63 = vmul.f32 %v1561_v40, %v359_v60  ;;  %v352_v3 = vadd.f32 %v1796_v56, %v328_v41  ;;  %v382_v39 = vmul.f32 %v1564_v9, %v359_v60  ;;  %v2414_v56 = vld [vmem:[#allocation17_spill] sm:$0xff] }
  0xd7   :  { %v400_v26 = vadd.f32 %v397_v4, %v370_v21  ;;  %v413_v28 = vmul.f32 %v1589_v8, %v391_v51  ;;  %v386_v2 = vadd.f32 %v383_v37, %v353_v48  ;;  %v408_v32 = vadd.f32 %v405_v5, %v378_v7  ;;  %v2416_v60 = vld [vmem:[#allocation29_spill] sm:$0xff] }
  0xd8   :  { %v396_v57 = vmul.f32 %v1569_v12, %v389_v54  ;;  %v1925_v22 = vstv %s1865_s27  ;;  %v404_v30 = vmul.f32 %v1586_v33, %v389_v54  ;;  %v412_v40 = vmul.f32 %v1589_v8, %v389_v54  ;;  %v2417_v33 = vld [vmem:[#allocation18_spill] sm:$0xff] }
  0xd9   :  { %v1933_v9 = vmul.f32 %v2415_v31, %v2414_v56  ;;  %v1937_v51 = vmul.f32 %v2416_v60, %v2414_v56  ;;  %v369_v29 = vadd.f32 %v366_v62, %v336_v47  ;;  %v377_v50 = vadd.f32 %v374_v63, %v344_v59 }
  0xda   :  { %v446_v41 = vpop.permute.xlu0 %445  ;;  %v1939_v12 = vpop.permute.xlu2 %621  ;;  %v1943_v4 = vmul.f32 %v1707_v52, %v2414_v56  ;;  %v1947_v8 = vmul.f32 %v2415_v31, %v2417_v33  ;;  %v385_v54 = vadd.f32 %v382_v39, %v352_v3  ;;  %v416_v48 = vadd.f32 %v413_v28, %v386_v2 }
  0xdb   :  { %v424_v37 = vadd.f32 %v1817_v58, %v400_v26  ;;  %v454_v5 = vmul.f32 %v1662_v10, %v448_v45  ;;  %v478_v21 = vpop.permute.xlu1 %477  ;;  %v399_v47 = vadd.f32 %v396_v57, %v369_v29  ;;  %v432_v7 = vadd.f32 %v1831_v17, %v408_v32 }
  0xdc   :  { %v462_v59 = vmul.f32 %v1675_v44, %v448_v45  ;;  %v1959_v62 = vmul.f32 %v2416_v60, %v2417_v33  ;;  %v407_v63 = vadd.f32 %v404_v30, %v377_v50  ;;  %v415_v58 = vadd.f32 %v412_v40, %v385_v54 }
  0xdd   :  { %v1965_v3 = vmul.f32 %v1707_v52, %v2417_v33  ;;  %v1968_v39 = vstv %s1911_s28  ;;  %v1974_v17 = vmul.f32 %v1777_v16, %v1883_v11  ;;  %v1978_v26 = vmul.f32 %v1780_v38, %v1883_v11 }
  0xde   :  { %v470_v28 = vmul.f32 %v1684_v13, %v448_v45  ;;  %v1982_v2 = vstv %s1916_s29  ;;  %v1988_v52 = vmul.f32 %v1783_v61, %v1883_v11  ;;  %v440_v32 = vadd.f32 %v1850_v0, %v416_v48 }
  0xdf   :  { %v457_v57 = vadd.f32 %v454_v5, %v424_v37  ;;  %v1992_v30 = vstv %s1921_s30  ;;  %v465_v40 = vadd.f32 %v462_v59, %v432_v7  ;;  %v423_v56 = vadd.f32 %v1859_v49, %v399_v47  ;;  %v2422_v47 = vld [vmem:[#allocation19_spill] sm:$0xff]  ;;  %s957_s30 = sshll.u32 %s2351_s3, 4  ;;  %s958_s30 = int_to_ptr.hbm [resolvable:$true] %s957_s30 }
  0xe0   :  { %v1996_v31 = vstv %s1927_s4  ;;  %v2000_v45 = vadd.f32 %v1802_v6, %v1878_v42  ;;  %v431_v60 = vadd.f32 %v1863_v19, %v407_v63  ;;  %v439_v11 = vadd.f32 %v1876_v25, %v415_v58  ;;  %v2418_v19 = vld [vmem:[#allocation20_spill] sm:$0xff] }
  0xe1   :  { %v2008_v0 = vadd.f32 %v1806_v24, %v1885_v20  ;;  %v2012_v49 = vadd.f32 %v1813_v15, %v1887_v18  ;;  %v473_v29 = vadd.f32 %v470_v28, %v440_v32  ;;  %v484_v50 = vmul.f32 %v1687_v27, %v478_v21 }
  0xe2   :  { %v476_v6 = vpop.permute.xlu0 %475  ;;  %v2015_v42 = vpop.permute.xlu2 %651  ;;  %v2019_v33 = vmul.f32 %v1996_v31, %v2418_v19  ;;  %v601_v25 = vstv %s1949_s5  ;;  %v453_v24 = vmul.f32 %v1662_v10, %v446_v41  ;;  %v492_v20 = vmul.f32 %v1690_v36, %v478_v21  ;;  %s1171_s5 = smov [#allocation10]  }
  0xe3   :  { %v535_v15 = vpop.permute.xlu1 %534  ;;  %v2027_v18 = vmul.f32 %v601_v25, %v2418_v19  ;;  %v609_v54 = vstv %s1953_s6  ;;  %v461_v48 = vmul.f32 %v1675_v44, %v446_v41  ;;  %v469_v37 = vmul.f32 %v1684_v13, %v446_v41 }
  0xe4   :  { %2419 = vst [vmem:[#allocation15_spill] sm:$0xff] %v2019_v33  ;;  %v2035_v5 = vmul.f32 %v609_v54, %v2418_v19  ;;  %v2039_v10 = vmul.f32 %v1996_v31, %v2422_v47  ;;  %v500_v7 = vmul.f32 %v1693_v53, %v478_v21  ;;  %v2043_v59 = vmul.f32 %v601_v25, %v2422_v47 }
  0xe5   :  { %2420 = vst [vmem:[#allocation24_spill] sm:$0xff] %v2027_v18  ;;  %v2046_v63 = vmul.f32 %v609_v54, %v2422_v47  ;;  %v2049_v58 = vstv %s1961_s7  ;;  %v2055_v44 = vmul.f32 %v1892_v43, %v1939_v12  ;;  %v487_v13 = vadd.f32 %v484_v50, %v457_v57  ;;  %v2424_v18 = vld [vmem:[#allocation21_spill] sm:$0xff] }
  0xe6   :  { %2421 = vst [vmem:[#allocation25_spill] sm:$0xff] %v2035_v5  ;;  %v2058_v41 = vstv %s1970_s8  ;;  %v2061_v28 = vstv %s1984_s9  ;;  %v456_v21 = vadd.f32 %v453_v24, %v423_v56  ;;  %v2067_v32 = vmul.f32 %v1895_v1, %v1939_v12 }
  0xe7   :  { %2423 = vst [vmem:[#allocation26_spill] sm:$0xff] %v2061_v28  ;;  %v2071_v19 = vmul.f32 %v1902_v55, %v1939_v12  ;;  %v495_v47 = vadd.f32 %v492_v20, %v465_v40  ;;  %v464_v57 = vadd.f32 %v461_v48, %v431_v60  ;;  %v472_v50 = vadd.f32 %v469_v37, %v439_v11 }
  0xe8   :  { %v483_v5 = vmul.f32 %v1687_v27, %v476_v6  ;;  %v2078_v56 = vmul.f32 %v2049_v58, %v2424_v18  ;;  %v503_v24 = vadd.f32 %v500_v7, %v473_v29  ;;  %v491_v33 = vmul.f32 %v1690_v36, %v476_v6 }
  0xe9   :  { %v499_v12 = vmul.f32 %v1693_v53, %v476_v6  ;;  %v2084_v40 = vmul.f32 %v2058_v41, %v2424_v18  ;;  %v511_v60 = vadd.f32 %v1933_v9, %v487_v13  ;;  %v2093_v20 = vmul.f32 %v2061_v28, %v2424_v18  ;;  %v1086_v13 = vld [vmem:[#allocation2 + $0x32] sm:$0xff] }
  0xea   :  { %2425 = vst [vmem:[#allocation30_spill] sm:$0xff] %v2078_v56  ;;  %v533_v11 = vpop.permute.xlu0 %532  ;;  %v2089_v27 = vpop.permute.xlu2 %708  ;;  %v2096_v29 = vstv %s2004_s1  ;;  %v2099_v36 = vstv %s2022_s10  ;;  %v519_v53 = vadd.f32 %v1937_v51, %v495_v47  ;;  %v541_v6 = vmul.f32 %v1836_v14, %v535_v15 }
  0xeb   :  { %2426 = vst [vmem:[#allocation16_spill] sm:$0xff] %v2084_v40  ;;  %v549_v9 = vmul.f32 %v1839_v34, %v535_v15  ;;  %v2106_v48 = vpop.permute.xlu1 %619  ;;  %v2109_v37 = vstv %s2030_s11  ;;  %v486_v18 = vadd.f32 %v483_v5, %v456_v21  ;;  %v557_v7 = vmul.f32 %v1844_v35, %v535_v15 }
  0xec   :  { %2427 = vst [vmem:[#allocation17_spill] sm:$0xff] %v2093_v20  ;;  %v604_v51 = vmul.f32 %v1086_v13, %v601_v25  ;;  %v494_v47 = vadd.f32 %v491_v33, %v464_v57  ;;  %v502_v20 = vadd.f32 %v499_v12, %v472_v50  ;;  %v527_v40 = vadd.f32 %v1943_v4, %v503_v24 }
  0xed   :  { %2428 = vst [vmem:[#allocation28_spill] sm:$0xff] %v2096_v29  ;;  %v612_v29 = vmul.f32 %v1086_v13, %v609_v54  ;;  %v2118_v56 = vmul.f32 %v1906_v46, %v2015_v42  ;;  %v2125_v5 = vstv %s2051_s12  ;;  %v2128_v15 = vstv %s2063_s13 }
  0xee   :  { %2429 = vst [vmem:[#allocation29_spill] sm:$0xff] %v2099_v36  ;;  %v596_v36 = vmul.f32 %v1086_v13, %v1996_v31  ;;  %v2134_v31 = vmul.f32 %v1925_v22, %v2015_v42  ;;  %v544_v4 = vadd.f32 %v541_v6, %v511_v60  ;;  %v552_v33 = vadd.f32 %v549_v9, %v519_v53  ;;  %v2434_v60 = vld [vmem:[#allocation22_spill] sm:$0xff] }
  0xef   :  { %2430 = vst [vmem:[#allocation18_spill] sm:$0xff] %v2109_v37  ;;  %v2122_v37 = vmul.f32 %v1909_v23, %v2015_v42  ;;  %v2137_v25 = vstv %s2073_s14  ;;  %v560_v54 = vadd.f32 %v557_v7, %v527_v40  ;;  %v510_v21 = vadd.f32 %v1947_v8, %v486_v18  ;;  %v1087_v7 = vld [vmem:[#allocation2 + $0x40] sm:$0xff] }
  0xf0   :  { %v2141_v57 = vadd.f32 %v596_v36, %v2000_v45  ;;  %v2144_v50 = vadd.f32 %v604_v51, %v2008_v0  ;;  %v518_v42 = vadd.f32 %v1959_v62, %v494_v47  ;;  %v526_v24 = vadd.f32 %v1965_v3, %v502_v20 }
  0xf1   :  { %v540_v12 = vmul.f32 %v1836_v14, %v533_v11  ;;  %v2152_v40 = vadd.f32 %v612_v29, %v2012_v49  ;;  %v2158_v0 = vmul.f32 %v2125_v5, %v2434_v60  ;;  %v2162_v36 = vmul.f32 %v2128_v15, %v2434_v60 }
  0xf2   :  { %2431 = vst [vmem:[#allocation20_spill] sm:$0xff] %v2141_v57  ;;  %v565_v8 = vpop.permute.xlu0 %564  ;;  %v739_v45 = vpop.permute.xlu2 %738  ;;  %v2166_v62 = vmul.f32 %v2137_v25, %v2434_v60  ;;  %v2169_v14 = vstv %s2086_s15  ;;  %v548_v3 = vmul.f32 %v1839_v34, %v533_v11  ;;  %v2178_v29 = vstv %s2101_s2 }
  0xf3   :  { %2432 = vst [vmem:[#allocation19_spill] sm:$0xff] %v2144_v50  ;;  %v571_v49 = vmul.f32 %v1777_v16, %v565_v8  ;;  %v2175_v20 = vpop.permute.xlu1 %649  ;;  %v2181_v53 = vstv %s2111_s16  ;;  %v556_v6 = vmul.f32 %v1844_v35, %v533_v11  ;;  %v579_v9 = vmul.f32 %v1780_v38, %v565_v8  ;;  %v2442_v50 = vld [vmem:[#allocation17_spill] sm:$0xff] }
  0xf4   :  { %2433 = vst [vmem:[#allocation21_spill] sm:$0xff] %v2152_v40  ;;  %v587_v18 = vmul.f32 %v1783_v61, %v565_v8  ;;  %v2189_v34 = vmul.f32 %v1087_v7, %v2049_v58  ;;  %v543_v16 = vadd.f32 %v540_v12, %v510_v21  ;;  %v2192_v51 = vmul.f32 %v1087_v7, %v2058_v41 }
  0xf5   :  { %v574_v13 = vadd.f32 %v571_v49, %v544_v4  ;;  %v2195_v47 = vmul.f32 %v1087_v7, %v2061_v28  ;;  %v715_v60 = vmul.f32 %v1968_v39, %v2089_v27  ;;  %v582_v35 = vadd.f32 %v579_v9, %v552_v33  ;;  %v2441_v28 = vld [vmem:[#allocation16_spill] sm:$0xff] }
  0xf6   :  { %v590_v38 = vadd.f32 %v587_v18, %v560_v54  ;;  %v2200_v11 = vstv %s2130_s17  ;;  %v551_v61 = vadd.f32 %v548_v3, %v518_v42  ;;  %v723_v8 = vmul.f32 %v1982_v2, %v2089_v27 }
  0xf7   :  { %v731_v4 = vmul.f32 %v1992_v30, %v2089_v27  ;;  %v598_v21 = vadd.f32 %v2039_v10, %v574_v13  ;;  %v559_v12 = vadd.f32 %v556_v6, %v526_v24  ;;  %v627_v49 = vmul.f32 %v1892_v43, %v2106_v48 }
  0xf8   :  { %v606_v33 = vadd.f32 %v2043_v59, %v582_v35  ;;  %v614_v54 = vadd.f32 %v2046_v63, %v590_v38  ;;  %v573_v42 = vadd.f32 %v1974_v17, %v543_v16  ;;  %v635_v27 = vmul.f32 %v1895_v1, %v2106_v48  ;;  %v2437_v35 = vld [vmem:[#allocation23_spill] sm:$0xff] }
  0xf9   :  { %v631_v3 = vadd.f32 %v2055_v44, %v598_v21  ;;  %v2218_v10 = vstv %s2154_s19  ;;  %v643_v24 = vmul.f32 %v1902_v55, %v2106_v48  ;;  %v2227_v63 = vstv %s2171_s20  ;;  %v2438_v21 = vld [vmem:[#allocation15_spill] sm:$0xff] }
  0xfa   :  { %2435 = vst [vmem:[#allocation22_spill] sm:$0xff] %v2218_v10  ;;  %v639_v6 = vadd.f32 %v2067_v32, %v606_v33  ;;  %v647_v9 = vadd.f32 %v2071_v19, %v614_v54  ;;  %v2224_v59 = vpop.permute.xlu0 %623  ;;  %v796_v18 = vpop.permute.xlu2 %795  ;;  %v581_v17 = vadd.f32 %v1978_v26, %v551_v61  ;;  %v2232_v44 = vstv %s2146_s18  ;;  %v2439_v26 = vld [vmem:[#allocation30_spill] sm:$0xff] }
  0xfb   :  { %2436 = vst [vmem:[#allocation31_spill] sm:$0xff] %v2227_v63  ;;  %v661_v7 = vadd.f32 %v2118_v56, %v631_v3  ;;  %v707_v16 = vpop.permute.xlu1 %706  ;;  %v2235_v13 = vstv %s2183_s21  ;;  %v589_v48 = vadd.f32 %v1988_v52, %v559_v12  ;;  %v856_v38 = vmul.f32 %v2218_v10, %v2437_v35  ;;  %v2440_v56 = vld [vmem:[#allocation28_spill] sm:$0xff]  ;;  %v2443_v12 = vld [vmem:[#allocation29_spill] sm:$0xff] }
  0xfc   :  { %v669_v32 = vadd.f32 %v2122_v37, %v639_v6  ;;  %v677_v19 = vadd.f32 %v2134_v31, %v647_v9  ;;  %v597_v33 = vadd.f32 %v2438_v21, %v573_v42  ;;  %v745_v54 = vmul.f32 %v2440_v56, %v739_v45  ;;  %v2444_v6 = vld [vmem:[#allocation18_spill] sm:$0xff]  ;;  %v2445_v9 = vld [vmem:[#allocation24_spill] sm:$0xff]  ;;  %v2446_v21 = vld [vmem:[#allocation25_spill] sm:$0xff] }
  0xfd   :  { %v685_v61 = vadd.f32 %v2439_v26, %v661_v7  ;;  %v864_v3 = vmul.f32 %v2227_v63, %v2437_v35  ;;  %v753_v37 = vmul.f32 %v2443_v12, %v739_v45  ;;  %v761_v31 = vmul.f32 %v2444_v6, %v739_v45 }
  0xfe   :  { %v693_v40 = vadd.f32 %v2441_v28, %v669_v32  ;;  %v701_v52 = vadd.f32 %v2442_v50, %v677_v19  ;;  %v605_v57 = vadd.f32 %v2445_v9, %v581_v17  ;;  %v657_v42 = vmul.f32 %v1906_v46, %v2175_v20 }
  0xff   :  { %v718_v10 = vadd.f32 %v715_v60, %v685_v61  ;;  %v2255_v7 = vstv %s2207_s22  ;;  %v613_v26 = vadd.f32 %v2446_v21, %v589_v48  ;;  %v630_v55 = vadd.f32 %v627_v49, %v597_v33  ;;  %v2273_v21 = vld [vmem:[#allocation2 + $0x50] sm:$0xff] }
 0x100   :  { %v726_v35 = vadd.f32 %v723_v8, %v693_v40  ;;  %v734_v63 = vadd.f32 %v731_v4, %v701_v52  ;;  %v665_v50 = vmul.f32 %v1909_v23, %v2175_v20  ;;  %v673_v45 = vmul.f32 %v1925_v22, %v2175_v20 }
 0x101   :  { %v748_v28 = vadd.f32 %v745_v54, %v718_v10  ;;  %v802_v17 = vmul.f32 %v2169_v14, %v796_v18  ;;  %v810_v19 = vmul.f32 %v2178_v29, %v796_v18  ;;  %v818_v61 = vmul.f32 %v2181_v53, %v796_v18  ;;  %v1088_v18 = vld [vmem:[#allocation2 + $0x4a] sm:$0xff] }
 0x102   :  { %v756_v60 = vadd.f32 %v753_v37, %v726_v35  ;;  %v764_v32 = vadd.f32 %v761_v31, %v734_v63  ;;  %v2265_v9 = vpop.permute.xlu0 %653  ;;  %v826_v49 = vpop.permute.xlu2 %825  ;;  %v638_v40 = vadd.f32 %v635_v27, %v605_v57  ;;  %v646_v8 = vadd.f32 %v643_v24, %v613_v26 }
 0x103   :  { %v660_v4 = vadd.f32 %v657_v42, %v630_v55  ;;  %v772_v10 = vadd.f32 %v2158_v0, %v748_v28  ;;  %v737_v48 = vpop.permute.xlu1 %736  ;;  %v832_v54 = vmul.f32 %v2200_v11, %v826_v49  ;;  %v840_v63 = vmul.f32 %v2232_v44, %v826_v49 }
 0x104   :  { %v780_v33 = vadd.f32 %v2162_v36, %v756_v60  ;;  %v788_v20 = vadd.f32 %v2166_v62, %v764_v32  ;;  %v668_v52 = vadd.f32 %v665_v50, %v638_v40  ;;  %v872_v31 = vmul.f32 %v1088_v18, %v2255_v7 }
 0x105   :  { %v805_v37 = vadd.f32 %v802_v17, %v772_v10  ;;  %v2277_v55 = vmul.f32 %v2273_v21, %v2049_v58  ;;  %v676_v57 = vadd.f32 %v673_v45, %v646_v8  ;;  %v848_v62 = vmul.f32 %v2235_v13, %v826_v49 }
 0x106   :  { %v813_v0 = vadd.f32 %v810_v19, %v780_v33  ;;  %v821_v36 = vadd.f32 %v818_v61, %v788_v20  ;;  %v714_v27 = vmul.f32 %v1968_v39, %v707_v16  ;;  %v722_v24 = vmul.f32 %v1982_v2, %v707_v16 }
 0x107   :  { %v835_v42 = vadd.f32 %v832_v54, %v805_v37  ;;  %v2284_v26 = vmul.f32 %v2273_v21, %v2058_v41  ;;  %v684_v35 = vadd.f32 %v2189_v34, %v660_v4  ;;  %v730_v28 = vmul.f32 %v1992_v30, %v707_v16  ;;  %v1090_v16 = vld [vmem:[#allocation2 + $0x41] sm:$0xff] }
 0x108   :  { %v843_v58 = vadd.f32 %v840_v63, %v813_v0  ;;  %v851_v50 = vadd.f32 %v848_v62, %v821_v36  ;;  %v692_v45 = vadd.f32 %v2192_v51, %v668_v52  ;;  %v744_v60 = vmul.f32 %v2440_v56, %v737_v48  ;;  %v2447_v52 = vld [vmem:[#allocation27_spill] sm:$0xff]  ;;  %v2448_v62 = vld [vmem:[#allocation20_spill] sm:$0xff] }
 0x109   :  { %v859_v17 = vadd.f32 %v856_v38, %v835_v42  ;;  %v752_v32 = vmul.f32 %v2443_v12, %v737_v48  ;;  %v700_v19 = vadd.f32 %v2195_v47, %v676_v57  ;;  %v760_v41 = vmul.f32 %v2444_v6, %v737_v48  ;;  %v1091_v42 = vld [vmem:[#allocation2 + $0x42] sm:$0xff] }
 0x10a   :  { %v867_v61 = vadd.f32 %v864_v3, %v843_v58  ;;  %v875_v49 = vadd.f32 %v872_v31, %v851_v50  ;;  %v711_v40 = vpop.permute.xlu0 %710  ;;  %v717_v8 = vadd.f32 %v714_v27, %v684_v35  ;;  %v725_v34 = vadd.f32 %v722_v24, %v692_v45  ;;  %v2449_v35 = vld [vmem:[#allocation22_spill] sm:$0xff]  ;;  %v2450_v58 = vld [vmem:[#allocation19_spill] sm:$0xff] }
 0x10b   :  { %v878_v4 = vmax.f32 %v859_v17, 0.0  ;;  %v768_v10 = vmul.f32 %v1090_v16, %v2125_v5  ;;  %v794_v33 = vpop.permute.xlu1 %793  ;;  %v629_v51 = vmul.f32 %v1892_v43, %v2224_v59  ;;  %v733_v38 = vadd.f32 %v730_v28, %v700_v19 }
 0x10c   :  { %v881_v20 = vmax.f32 %v867_v61, 0.0  ;;  %v776_v54 = vmul.f32 %v1090_v16, %v2128_v15  ;;  %v637_v47 = vmul.f32 %v1895_v1, %v2224_v59  ;;  %v747_v3 = vadd.f32 %v744_v60, %v717_v8  ;;  %v2452_v61 = vld [vmem:[#allocation31_spill] sm:$0xff] }
 0x10d   :  { %v755_v48 = vadd.f32 %v752_v32, %v725_v34  ;;  %v784_v63 = vmul.f32 %v1090_v16, %v2137_v25  ;;  %v645_v37 = vmul.f32 %v2447_v52, %v2224_v59  ;;  %v887_v31 = vmax.f32 %v875_v49, 0.0 }
 0x10e   :  { %v884_v18 = vadd.f32 %v881_v20, %v878_v4  ;;  %v763_v57 = vadd.f32 %v760_v41, %v733_v38  ;;  %v659_v43 = vmul.f32 %v1906_v46, %v2265_v9  ;;  %v667_v0 = vmul.f32 %v1909_v23, %v2265_v9  ;;  %v2451_v23 = vld [vmem:[#allocation21_spill] sm:$0xff]  ;;  %v2453_v20 = vld [vmem:[#allocation26_spill] sm:$0xff] }
 0x10f   :  { %v801_v36 = vmul.f32 %v2169_v14, %v794_v33  ;;  %v809_v1 = vmul.f32 %v2178_v29, %v794_v33  ;;  %v632_v27 = vadd.f32 %v629_v51, %v2448_v62  ;;  %v817_v24 = vmul.f32 %v2181_v53, %v794_v33 }
 0x110   :  { %v855_v59 = vmul.f32 %v1091_v42, %v2449_v35  ;;  %v890_v28 = vadd.f32 %v887_v31, %v884_v18  ;;  %v640_v50 = vadd.f32 %v637_v47, %v2450_v58  ;;  %v675_v46 = vmul.f32 %v1925_v22, %v2265_v9 }
 0x111   :  { %v771_v45 = vadd.f32 %v768_v10, %v747_v3  ;;  %v779_v17 = vadd.f32 %v776_v54, %v755_v48  ;;  %v648_v60 = vadd.f32 %v645_v37, %v2451_v23  ;;  %v787_v32 = vadd.f32 %v784_v63, %v763_v57 }
 0x112   :  { %v741_v19 = vpop.permute.xlu0 %740  ;;  %v863_v49 = vmul.f32 %v1091_v42, %v2452_v61  ;;  %v871_v41 = vmul.f32 %v1091_v42, %v2255_v7  ;;  %v662_v8 = vadd.f32 %v659_v43, %v632_v27  ;;  %v670_v34 = vadd.f32 %v667_v0, %v640_v50 }
 0x113   :  { %v804_v4 = vadd.f32 %v801_v36, %v771_v45  ;;  %v812_v16 = vadd.f32 %v809_v1, %v779_v17  ;;  %v824_v33 = vpop.permute.xlu1 %823  ;;  %v820_v51 = vadd.f32 %v817_v24, %v787_v32  ;;  %v678_v10 = vadd.f32 %v675_v46, %v648_v60 }
 0x114   :  { %v831_v38 = vmul.f32 %v2200_v11, %v824_v33  ;;  %v839_v22 = vmul.f32 %v2232_v44, %v824_v33  ;;  %v847_v9 = vmul.f32 %v2235_v13, %v824_v33  ;;  %v699_v54 = vmul.f32 %v2273_v21, %v2453_v20 }
 0x115   :  { %v716_v47 = vmul.f32 %v1968_v39, %v711_v40  ;;  %v892_v3 = vlaneseq  ;;  %v724_v48 = vmul.f32 %v1982_v2, %v711_v40  ;;  %v686_v18 = vadd.f32 %v2277_v55, %v662_v8  ;;  %v1093_v8 = vld [vmem:[#allocation2 + $0x52] sm:$0xff] }
 0x116   :  { %v834_v63 = vadd.f32 %v831_v38, %v804_v4  ;;  %v842_v52 = vadd.f32 %v839_v22, %v812_v16  ;;  %v850_v37 = vadd.f32 %v847_v9, %v820_v51  ;;  %v694_v31 = vadd.f32 %v2284_v26, %v670_v34  ;;  %v1092_v26 = vld [vmem:[#allocation2 + $0x51] sm:$0xff] }
 0x117   :  { %v732_v57 = vmul.f32 %v1992_v30, %v711_v40  ;;  %v746_v43 = vmul.f32 %v2440_v56, %v741_v19  ;;  %v754_v0 = vmul.f32 %v2443_v12, %v741_v19  ;;  %v702_v39 = vadd.f32 %v699_v54, %v678_v10 }
 0x118   :  { %v858_v36 = vadd.f32 %v855_v59, %v834_v63  ;;  %v866_v21 = vadd.f32 %v863_v49, %v842_v52  ;;  %v874_v1 = vadd.f32 %v871_v41, %v850_v37  ;;  %v762_v62 = vmul.f32 %v2444_v6, %v741_v19 }
 0x119   :  { %v897_v2 = vand.u32 127, %v892_v3  ;;  %v719_v27 = vadd.f32 %v716_v47, %v686_v18  ;;  %v727_v24 = vadd.f32 %v724_v48, %v694_v31  ;;  %v735_v50 = vadd.f32 %v732_v57, %v702_v39 }
 0x11a   :  { %v877_v42 = vmax.f32 %v858_v36, 0.0  ;;  %v880_v58 = vmax.f32 %v866_v21, 0.0  ;;  %v798_v55 = vpop.permute.xlu0 %797  ;;  %v770_v30 = vmul.f32 %v1092_v26, %v2125_v5  ;;  %v778_v56 = vmul.f32 %v1092_v26, %v2128_v15 }
 0x11b   :  { %v749_v40 = vadd.f32 %v746_v43, %v719_v27  ;;  %v757_v12 = vadd.f32 %v754_v0, %v727_v24  ;;  %v886_v59 = vmax.f32 %v874_v1, 0.0  ;;  %v765_v45 = vadd.f32 %v762_v62, %v735_v50 }
 0x11c   :  { %v883_v46 = vadd.f32 %v880_v58, %v877_v42  ;;  %v786_v17 = vmul.f32 %v1092_v26, %v2137_v25  ;;  %vm901_vm1 = vcmp.lt.s32.totalorder %v897_v2, 18  ;;  %v803_v6 = vmul.f32 %v2169_v14, %v798_v55 }
 0x11d   :  { %v811_v23 = vmul.f32 %v2178_v29, %v798_v55  ;;  %v819_v32 = vmul.f32 %v2181_v53, %v798_v55  ;;  %v773_v19 = vadd.f32 %v770_v30, %v749_v40  ;;  %v781_v49 = vadd.f32 %v778_v56, %v757_v12 }
 0x11e   :  { %v889_v60 = vadd.f32 %v886_v59, %v883_v46  ;;  %v906_v15 = vsel %vm901_vm1, %v890_v28, 0.0  ;;  %v789_v41 = vadd.f32 %v786_v17, %v765_v45  ;;  %v857_v34 = vmul.f32 %v1093_v8, %v2449_v35 }
 0x11f   :  { %v893_v4 = vshrl.u32 %v892_v3, 7  ;;  %v806_v16 = vadd.f32 %v803_v6, %v773_v19  ;;  %v814_v33 = vadd.f32 %v811_v23, %v781_v49  ;;  %v865_v14 = vmul.f32 %v1093_v8, %v2452_v61 }
 0x120   :  { %v905_v5 = vsel %vm901_vm1, %v889_v60, 0.0  ;;  %v873_v29 = vmul.f32 %v1093_v8, %v2255_v7  ;;  %v822_v53 = vadd.f32 %v819_v32, %v789_v41 }
 0x121   :  { %v908_v25 = vadd.f32 %v906_v15, %v905_v5  ;;  %v895_v35 = vadd.s32 16, %v893_v4 }
 0x122   :  { %v828_v51 = vpop.permute.xlu0 %827 }
 0x123   :  { %v833_v38 = vmul.f32 %v2200_v11, %v828_v51  ;;  %v841_v22 = vmul.f32 %v2232_v44, %v828_v51  ;;  %v849_v28 = vmul.f32 %v2235_v13, %v828_v51  ;;  %vm900_vm2 = vcmp.lt.s32.totalorder %v895_v35, 18 }
 0x124   :  { %vm904_vm3 = vmand %vm900_vm2, %vm901_vm1  ;;  %v1170_v44 = vmov 972.0  }
 0x125   :  { %v836_v9 = vadd.f32 %v833_v38, %v806_v16  ;;  %v844_v10 = vadd.f32 %v841_v22, %v814_v33  ;;  %v852_v20 = vadd.f32 %v849_v28, %v822_v53  ;;  %1080 = vrcp.f32 %v1170_v44 }
 0x127   :  { %v860_v54 = vadd.f32 %v857_v34, %v836_v9  ;;  %v868_v47 = vadd.f32 %v865_v14, %v844_v10  ;;  %v876_v3 = vadd.f32 %v873_v29, %v852_v20 }
 0x129   :  { %v879_v48 = vmax.f32 %v860_v54, 0.0  ;;  %v882_v63 = vmax.f32 %v868_v47, 0.0  ;;  %v888_v61 = vmax.f32 %v876_v3, 0.0 }
 0x12b   :  { %v885_v7 = vadd.f32 %v882_v63, %v879_v48  ;;  %v1081_v13 = vpop.eup %1080 }
 0x12c   :  { %v920_v18 = vmul.f32 972.0, %v1081_v13  ;;  %vm924_vm4 = vweird.f32 %v1081_v13 }
 0x12d   :  { %v891_v52 = vadd.f32 %v888_v61, %v885_v7 }
 0x12e   :  { %v921_v31 = vsub.f32 1.0, %v920_v18 }
 0x12f   :  { %v907_v11 = vsel %vm904_vm3, %v891_v52, 0.0 }
 0x130   :  { %v909_v37 = vadd.f32 %v908_v25, %v907_v11  ;;  %v922_v36 = vmul.f32 %v1081_v13, %v921_v31 }
 0x132   :  { %910 = vadd.xlane.f32.xlu1 %v909_v37  ;;  %v923_v39 = vadd.f32 %v1081_v13, %v922_v36 }
 0x134   :  { %v925_v27 = vsel %vm924_vm4, %v1081_v13, %v923_v39 }
 0x1a5   :  { %v911_v57 = vpop.xlane.xlu1 %910 }
 0x1a6   :  { %v912_v43 = vrot.slane %v911_v57, 4 }
 0x1a8   :  { %v913_v0 = vadd.f32 %v912_v43, %v911_v57 }
 0x1aa   :  { %v914_v21 = vrot.slane %v913_v0, 2 }
 0x1ac   :  { %v915_v1 = vadd.f32 %v914_v21, %v913_v0 }
 0x1ae   :  { %v916_v62 = vrot.slane %v915_v1, 1 }
 0x1b0   :  { %v917_v2 = vadd.f32 %v916_v62, %v915_v1 }
 0x1b2   :  { %1052 = vpush %v917_v2 }
 0x1b3   :  { %1054 = vpush %v925_v27 }
 0x1e3   :  { %s1053_s23 = spop %1052 }
 0x1e4   :  { %s1055_s24 = spop %1054 }
 0x1e5   :  { %s927_s25 = smul.f32 %s1055_s24, %s1053_s23 }
 0x1e7   :  { %s928_s0 = ssub.f32 0.0, %s927_s25 }
 0x1e9   :  { %v929_v24 = vstv %s928_s0 }
 0x1ea   :  { %v930_v42 = vmul.f32 1.442695, %v929_v24 }
 0x1ec   :  { %1082 = vpow2.f32 %v930_v42 }
 0x1f2   :  { %v1083_v58 = vpop.eup %1082 }
 0x1f3   :  { %1056 = vpush %v1083_v58 }
 0x224   :  { %s1057_s26 = spop %1056 }
 0x225   :  { %s933_s27 = sadd.f32 1.0, %s1057_s26 }
 0x227   :  { %v934_v55 = vstv %s933_s27 }
 0x228   :  { %1084 = vrcp.f32 %v934_v55  ;;  %v946_v56 = vand.u32 2147483648, %v934_v55  ;;  %v944_v12 = vand.u32 2147483647, %v934_v55  ;;  %vm940_vm6 = vweird.f32 %v934_v55 }
 0x22a   :  { %v947_v46 = vor.u32 1.1754944e-38, %v946_v56  ;;  %vm945_vm8 = vcmp.eq.f32.partialorder %v944_v12, 8.507059e+37 }
 0x22e   :  { %v1085_v50 = vpop.eup %1084 }
 0x22f   :  { %v936_v26 = vmul.f32 %v1085_v50, %v934_v55  ;;  %vm941_vm5 = vweird.f32 %v1085_v50 }
 0x230   :  { %vm942_vm7 = vmor %vm940_vm6, %vm941_vm5 }
 0x231   :  { %v937_v30 = vsub.f32 1.0, %v936_v26 }
 0x233   :  { %v938_v40 = vmul.f32 %v1085_v50, %v937_v30 }
 0x235   :  { %v939_v59 = vadd.f32 %v1085_v50, %v938_v40 }
 0x237   :  { %v943_v45 = vsel %vm942_vm7, %v1085_v50, %v939_v59 }
 0x238   :  { %v948_v17 = vsel %vm945_vm8, %v947_v46, %v943_v45 }
 0x239   :  { %1058 = vpush %v948_v17 }
 0x26a   :  { %s1059_s4 = spop %1058 }
 0x26b   :  { %951 = sst [smem:[#allocation10]] %s1059_s4 }
 0x26c   :  { %960 = dma.smem_to_hbm %s1171_s5, 16, %s958_s30, [#allocation5]  }
 0x26d   :  { %1160 = dma.done.wait [#allocation5], 16  }
 0x26e   :  { %1161 = vsyncadd [#allocation5], 4294967280 }
 0x26f   :  { %965 = sfence }
 0x270   :  { %966 = vsyncpa [#allocation4], 1 }
 0x271   :  { %967 = vsyncpa [#allocation5], 1 }
 0x272   :  { %968 = vsyncpa [#allocation6], 1 }
 0x273   :  { %969 = vsyncpa [#allocation9], 1 }

</bundles_post_ra>
